<compile_context>
chip_gen: v5e
topology: v5e:2x2
jax: 0.10.0
libtpu: 0.0.40
codegen_flags: <defaults>
</compile_context>

<pallas_src>
import math
import functools

import numpy as np
import jax
import jax.numpy as jnp
from jax.experimental import pallas as pl
from jax.experimental.pallas import tpu as pltpu

SAMPLE_RATE = 24000.0
BAND_TYPES = ("low_shelf", "peaking", "peaking", "peaking", "peaking", "high_shelf")

MIN_GAIN_DB, MAX_GAIN_DB = -24.0, 24.0
MIN_Q, MAX_Q = 0.1, 10.0


def _peq_band_ranges(fs):
    # TODO(synk): port min/max follow the deepafx-st ParametricEQ defaults (gain +/-24 dB,
    # Q in [0.1, 10], per-band cutoff ranges); adjust here if a different config is used.
    hi = (int(fs) // 2) * 0.9
    return [
        (MIN_GAIN_DB, MAX_GAIN_DB), (20.0, 200.0), (MIN_Q, MAX_Q),      # low shelf (g, fc, Q)
        (MIN_GAIN_DB, MAX_GAIN_DB), (200.0, 2000.0), (MIN_Q, MAX_Q),    # band 1
        (MIN_GAIN_DB, MAX_GAIN_DB), (200.0, 4000.0), (MIN_Q, MAX_Q),    # band 2
        (MIN_GAIN_DB, MAX_GAIN_DB), (2000.0, 8000.0), (MIN_Q, MAX_Q),   # band 3
        (MIN_GAIN_DB, MAX_GAIN_DB), (4000.0, hi), (MIN_Q, MAX_Q),       # band 4
        (MIN_GAIN_DB, MAX_GAIN_DB), (4000.0, hi), (MIN_Q, MAX_Q),       # high shelf
    ]


def _round_up(v, m):
    return ((v + m - 1) // m) * m


def _vmem_capacity_bytes():
    """Physical VMEM of the current chip; conservative v7x fallback if unknown."""
    try:
        cap = int(pltpu.get_tpu_info().vmem_capacity_bytes)
        if cap > 0:
            return cap
    except Exception:
        pass
    return 64 * 1024 * 1024


def _choose_tiles(T, F_pad, bs_pad, itemsize, vmem_limit_bytes,
                  max_tile_bins=None, max_batch_tile=None):
    """Pick (batch tile tb, frequency tile tf).

    Priorities (per perf review):
      1. tb as large as possible: the streamed-CS arithmetic intensity is
         ~4*tb/itemsize FLOP/byte (forward + transpose-reuse inverse); tb>=256
         clears the v7x HBM knee, ~384+ the v6e knee.  Batches >= 256 rows are
         still split into >= 2 tiles so a v7x megacore can shard the batch axis.
      2. tf as large as then fits (amortizes ~0.35us per grid step).
    The working-set model counts the double-buffered CS/x/y/aux/coef blocks and
    the in-kernel f32 temporaries, so long signals shrink tb instead of blowing
    past v7x's 64 MiB physical VMEM.
    """
    if bs_pad >= 1024:
        tb_pref = 512
    elif bs_pad >= 512:
        tb_pref = 256
    elif bs_pad >= 256:
        tb_pref = _round_up((bs_pad + 1) // 2, 8)   # two tiles, each >= 128
    else:
        tb_pref = bs_pad
    if max_batch_tile is not None:
        tb_pref = min(tb_pref, _round_up(int(max_batch_tile), 8))
    tb_pref = max(8, min(tb_pref, bs_pad))

    tf_cap = F_pad if max_tile_bins is None else max(
        128, min(F_pad, _round_up(int(max_tile_bins), 128)))
    tf_opts = [c for c in range(128, F_pad + 1, 128) if F_pad % c == 0 and c <= tf_cap]
    tf_opts.sort(reverse=True)                      # prefer fewer grid steps

    budget = vmem_limit_bytes - (4 << 20)           # headroom for compiler scratch

    def working_set(tb, tf):
        cs = 2 * T * (2 * tf) * itemsize            # streamed [cos|sin] tile, double buffered
        aux = 2 * 8 * tf * 4
        xblk = 2 * tb * T * itemsize
        yblk = 2 * tb * T * 4
        coef = 2 * tb * 32 * 4
        temps = 4 * tb * (2 * tf) * 4 + tb * T * 4  # XX / H / Y f32 temporaries + contrib
        return cs + aux + xblk + yblk + coef + temps

    tb_cands = []
    t = tb_pref
    while True:
        tb_cands.append(t)
        if t <= 8:
            break
        t = max(8, _round_up(t // 2, 8))

    for tb in tb_cands:
        for tf in tf_opts:
            if working_set(tb, tf) <= budget:
                return tb, tf

    # TODO(synk): add a time-axis (DFT-row) tiling path for signals long enough that
    # even the (tb=8, tf=128) working set overflows VMEM.
    raise ValueError(
        f"FSM working set for T={T} does not fit in VMEM "
        f"(needs >= {working_set(8, tf_opts[-1])} bytes, budget {budget} bytes).")


@functools.lru_cache(maxsize=8)
def _fsm_constants(T, tf, dtype):
    """Host-built (T, 2*F_pad) interleaved [cos | -sin] rfft matrix (per-tile column
    layout [C_k | S_k]) plus a (4, F_pad) aux array:
    rows = [cos(w_k), sin(w_k), irfft cos scale, irfft sin scale].
    The Nyquist bin is an ordinary matrix column (no in-kernel epilogue); lane-pad
    bins beyond T//2+1 have zero columns and zero scales, and are evaluated at
    w = 0 so the cascade response there stays finite."""
    F_full = T // 2 + 1
    F_pad = _round_up(max(F_full, 128), 128)

    n = np.arange(T, dtype=np.float64)[:, None]
    kk = np.arange(F_full, dtype=np.float64)[None, :]
    ang = (2.0 * np.pi / T) * n * kk
    Cf = np.zeros((T, F_pad), np.float64)
    Sf = np.zeros((T, F_pad), np.float64)
    Cf[:, :F_full] = np.cos(ang)
    Sf[:, :F_full] = -np.sin(ang)                  # rfft convention e^{-j w n k}

    nk = F_pad // tf
    CS = np.concatenate([Cf.reshape(T, nk, tf), Sf.reshape(T, nk, tf)], axis=2)
    CS = CS.reshape(T, 2 * F_pad)                  # tile k -> columns [2*tf*k, 2*tf*(k+1))

    wk = (2.0 * np.pi / T) * np.arange(F_pad, dtype=np.float64)
    c1 = np.cos(wk)
    s1 = np.sin(wk)
    csc = np.full(F_pad, 2.0 / T)                  # irfft synthesis scales
    ssc = np.full(F_pad, 2.0 / T)
    csc[0] = 1.0 / T
    ssc[0] = 0.0                                   # DC
    csc[F_full - 1] = 1.0 / T
    ssc[F_full - 1] = 0.0                          # Nyquist
    if F_pad > F_full:
        c1[F_full:] = 1.0
        s1[F_full:] = 0.0
        csc[F_full:] = 0.0
        ssc[F_full:] = 0.0
    aux = np.stack([c1, s1, csc, ssc], axis=0)

    return jnp.asarray(CS, dtype), jnp.asarray(aux, jnp.float32)


def _controller_to_biquad_coefs(p, w_fc, b_fc, fs):
    """Linear(22->18) + sigmoid + denormalize + RBJ biquad coefficients, normalized
    by a0.  O(bs*30) work, hoisted out of the Pallas frequency loop.
    Returns (bs, 32) f32: [b0(6) | b1(6) | b2(6) | a1(6) | a2(6) | pad(2)]."""
    p = jnp.asarray(p, jnp.float32)
    z = p @ jnp.asarray(w_fc, jnp.float32).T + jnp.asarray(b_fc, jnp.float32)
    q = jax.nn.sigmoid(z)

    ranges = np.asarray(_peq_band_ranges(fs), np.float32)          # (18, 2), (g,f,Q)*6
    lo = jnp.asarray(ranges[:, 0])[None, :]
    hi = jnp.asarray(ranges[:, 1])[None, :]
    d = q * (hi - lo) + lo
    g, fc, qf = d[:, 0::3], d[:, 1::3], d[:, 2::3]                 # (bs, 6) each

    A = jnp.power(10.0, g / 40.0)
    w0 = (2.0 * np.pi / fs) * fc
    cw = jnp.cos(w0)
    alpha = jnp.sin(w0) / (2.0 * qf)
    ts = 2.0 * jnp.sqrt(A) * alpha
    Ap1, Am1 = A + 1.0, A - 1.0

    band = np.arange(6)
    is_peak = jnp.asarray(((band >= 1) & (band <= 4))[None, :])    # bands 1..4 peaking
    sgn = jnp.asarray(np.where(band == 0, -1.0, 1.0).astype(np.float32))[None, :]

    # shelf formulas (low/high differ only by the sign of the (A -/+ 1)*cos terms)
    sb0 = A * (Ap1 + sgn * Am1 * cw + ts)
    sb1 = -2.0 * A * (sgn * Am1 + Ap1 * cw)
    sb2 = A * (Ap1 + sgn * Am1 * cw - ts)
    sa0 = Ap1 - sgn * Am1 * cw + ts
    sa1 = 2.0 * (sgn * Am1 - Ap1 * cw)
    sa2 = Ap1 - sgn * Am1 * cw - ts
    # peaking formulas
    pb0 = 1.0 + alpha * A
    pb1 = -2.0 * cw
    pb2 = 1.0 - alpha * A
    pa0 = 1.0 + alpha / A
    pa2 = 1.0 - alpha / A

    b0 = jnp.where(is_peak, pb0, sb0)
    b1 = jnp.where(is_peak, pb1, sb1)
    b2 = jnp.where(is_peak, pb2, sb2)
    a0 = jnp.where(is_peak, pa0, sa0)
    a1 = jnp.where(is_peak, pb1, sa1)
    a2 = jnp.where(is_peak, pa2, sa2)

    inv_a0 = 1.0 / a0
    coef = jnp.concatenate(
        [b0 * inv_a0, b1 * inv_a0, b2 * inv_a0, a1 * inv_a0, a2 * inv_a0], axis=1)
    return jnp.pad(coef, ((0, 0), (0, 2))).astype(jnp.float32)     # (bs, 32)


def _autodiff_channel_kernel(coef_ref, x_ref, cs_ref, aux_ref, y_ref, *, precision):
    """One (batch-tile, frequency-tile) grid step of the FSM parametric EQ.

    coef_ref : (tb, 32)   f32        per-row normalized biquad coefficients (resident)
    x_ref    : (tb, T)    DFT dtype  input audio (resident across the k axis)
    cs_ref   : (T, 2*tf)  DFT dtype  interleaved [cos | -sin] rfft columns (streamed)
    aux_ref  : (4, tf)    f32        [cos w_k, sin w_k, irfft cos scale, irfft sin scale]
    y_ref    : (tb, T)    f32        output, accumulated across the k axis
    """
    k = pl.program_id(1)
    tf = aux_ref.shape[1]

    # ---- per-bin unit-circle evaluation points (double angle gives e^{-2jw}) ----
    c1 = aux_ref[0:1, :]
    s1 = aux_ref[1:2, :]
    csc = aux_ref[2:3, :]
    ssc = aux_ref[3:4, :]
    c2 = 2.0 * c1 * c1 - 1.0
    s2 = 2.0 * s1 * c1

    # ---- 6-band cascade in product form: accumulate complex numerator/denominator,
    #      ONE approx reciprocal at the end (EUP slot, not VALU) ----
    coef = coef_ref[...]
    Nre = Nim = Dre = Dim = None
    for sec in range(6):
        bb0 = coef[:, sec:sec + 1]
        bb1 = coef[:, 6 + sec:7 + sec]
        bb2 = coef[:, 12 + sec:13 + sec]
        ba1 = coef[:, 18 + sec:19 + sec]
        ba2 = coef[:, 24 + sec:25 + sec]
        Bre = bb0 + bb1 * c1 + bb2 * c2
        Bim = -(bb1 * s1 + bb2 * s2)
        Are = 1.0 + ba1 * c1 + ba2 * c2
        Aim = -(ba1 * s1 + ba2 * s2)
        if sec == 0:
            Nre, Nim, Dre, Dim = Bre, Bim, Are, Aim
        else:
            Nre, Nim = Nre * Bre - Nim * Bim, Nre * Bim + Nim * Bre
            Dre, Dim = Dre * Are - Dim * Aim, Dre * Aim + Dim * Are
    inv_den = pl.reciprocal(Dre * Dre + Dim * Dim, approx=True)
    Hre = (Nre * Dre + Nim * Dim) * inv_den
    Him = (Nim * Dre - Nre * Dim) * inv_den

    # ---- FSM filtering: fused rfft / irfft matmuls on the MXU ----
    cs = cs_ref[...]                                                 # (T, 2*tf)
    xb = x_ref[...]
    if xb.dtype != cs.dtype:
        xb = xb.astype(cs.dtype)
    XX = jax.lax.dot_general(xb, cs, (((1,), (0,)), ((), ())),
                             preferred_element_type=jnp.float32,
                             precision=precision)                    # (tb, 2*tf)
    Xre, Xim = XX[:, :tf], XX[:, tf:]

    Yre = ((Xre * Hre - Xim * Him) * csc).astype(cs.dtype)
    Yim = ((Xre * Him + Xim * Hre) * ssc).astype(cs.dtype)
    YY = jnp.concatenate([Yre, Yim], axis=1)                         # (tb, 2*tf)

    # irfft contribution of this tile, reusing the SAME cs block transposed
    # (trans_b-style contraction, the standard MXU pattern as in flash-attn q.k^T).
    # TODO(synk): if the lowered MLIR shows a per-step relayout of `cs` here, stream
    # a pre-transposed copy instead (doubles CS HBM bytes; weigh against roofline).
    contrib = jax.lax.dot_general(YY, cs, (((1,), (1,)), ((), ())),
                                  preferred_element_type=jnp.float32,
                                  precision=precision)               # (tb, T)

    @pl.when(k == 0)
    def _():
        y_ref[...] = jnp.zeros_like(y_ref)

    y_ref[...] += contrib


def autodiff_channel(x, p, w_fc, b_fc, fs=SAMPLE_RATE,
                     dft_dtype=jnp.bfloat16, max_tile_bins=None, max_batch_tile=None):
    """x: (bs, T) float32 audio, p: (bs, 22) float32 controller features.
    dft_dtype: storage/stream dtype of the DFT matrix and of x inside the kernel
    (bf16 halves the dominant HBM stream, ~1e-3..1e-2 relative error; pass
    jnp.float32 for exact HIGHEST-precision multi-pass MXU dots)."""
    x = jnp.asarray(x, jnp.float32)
    p = jnp.asarray(p, jnp.float32)
    bs, T = x.shape
    assert T % 2 == 0, "signal length must be even (rfft Nyquist bin)"

    dtype = np.dtype(dft_dtype)
    F_full = T // 2 + 1                              # rfft bins incl. DC and Nyquist
    F_pad = _round_up(max(F_full, 128), 128)         # lane-aligned, zero-padded columns

    cap = _vmem_capacity_bytes()
    vmem_limit = max(32 << 20, min(int(cap * 0.82), cap - (8 << 20)))

    bs_pad0 = _round_up(max(bs, 1), 8)
    tb, tf = _choose_tiles(T, F_pad, bs_pad0, dtype.itemsize, vmem_limit,
                           max_tile_bins=max_tile_bins, max_batch_tile=max_batch_tile)
    nb = -(-bs_pad0 // tb)
    bs_pad = nb * tb
    nk = F_pad // tf

    CS, aux = _fsm_constants(T, tf, dtype)

    # controller + RBJ coefficients hoisted out of the frequency loop (tiny)
    coef = _controller_to_biquad_coefs(p, w_fc, b_fc, float(fs))

    x_in = x.astype(dtype)                           # hoisted cast (halves x HBM / VMEM for bf16)
    if bs_pad != bs:
        x_in = jnp.pad(x_in, ((0, bs_pad - bs), (0, 0)))
        coef = jnp.pad(coef, ((0, bs_pad - bs), (0, 0)))   # zero rows -> H = 0, y = 0 (no NaNs)

    precision = jax.lax.Precision.HIGHEST if dtype == jnp.float32 else None

    cost = pl.CostEstimate(
        flops=int(8 * bs_pad * T * F_pad),                         # fused rfft + irfft matmuls
        transcendentals=int(bs_pad * F_pad),                       # one approx reciprocal / bin-row
        bytes_accessed=int(nb * (T * 2 * F_pad * dtype.itemsize + 4 * F_pad * 4)
                           + bs_pad * T * dtype.itemsize           # x (read once per batch tile)
                           + bs_pad * T * 4                        # y write
                           + bs_pad * 32 * 4),
    )

    out = pl.pallas_call(
        functools.partial(_autodiff_channel_kernel, precision=precision),
        out_shape=jax.ShapeDtypeStruct((bs_pad, T), jnp.float32),
        grid=(nb, nk),
        in_specs=[
            pl.BlockSpec((tb, 32), lambda b, k: (b, 0)),        # biquad coefficients (resident)
            pl.BlockSpec((tb, T), lambda b, k: (b, 0)),         # x (resident across k)
            pl.BlockSpec((T, 2 * tf), lambda b, k: (0, k)),     # streamed [cos|sin] DFT tile
            pl.BlockSpec((4, tf), lambda b, k: (0, k)),         # per-bin trig + irfft scales
        ],
        out_specs=pl.BlockSpec((tb, T), lambda b, k: (b, 0)),   # accumulator across k
        compiler_params=pltpu.CompilerParams(
            dimension_semantics=("parallel", "arbitrary"),
            vmem_limit_bytes=int(vmem_limit)),
        cost_estimate=cost,
    )(coef, x_in, CS, aux)
    return out[:bs]


# ----------------------------- pure-JAX reference -----------------------------
def _rbj_biquad_response(ftype, g_db, fc, qf, fs, e1, e2):
    A = 10.0 ** (g_db / 40.0)
    w0 = 2.0 * jnp.pi * fc / fs
    alpha = jnp.sin(w0) / (2.0 * qf)
    cw = jnp.cos(w0)
    sqA = jnp.sqrt(A)
    if ftype == "low_shelf":
        b0 = A * ((A + 1) - (A - 1) * cw + 2 * sqA * alpha)
        b1 = 2 * A * ((A - 1) - (A + 1) * cw)
        b2 = A * ((A + 1) - (A - 1) * cw - 2 * sqA * alpha)
        a0 = (A + 1) + (A - 1) * cw + 2 * sqA * alpha
        a1 = -2 * ((A - 1) + (A + 1) * cw)
        a2 = (A + 1) + (A - 1) * cw - 2 * sqA * alpha
    elif ftype == "high_shelf":
        b0 = A * ((A + 1) + (A - 1) * cw + 2 * sqA * alpha)
        b1 = -2 * A * ((A - 1) + (A + 1) * cw)
        b2 = A * ((A + 1) + (A - 1) * cw - 2 * sqA * alpha)
        a0 = (A + 1) - (A - 1) * cw + 2 * sqA * alpha
        a1 = 2 * ((A - 1) - (A + 1) * cw)
        a2 = (A + 1) - (A - 1) * cw - 2 * sqA * alpha
    else:  # peaking
        b0 = 1 + alpha * A
        b1 = -2 * cw
        b2 = 1 - alpha * A
        a0 = 1 + alpha / A
        a1 = -2 * cw
        a2 = 1 - alpha / A
    B = b0 + b1 * e1 + b2 * e2
    Aden = a0 + a1 * e1 + a2 * e2
    return B / Aden


def autodiff_channel_ref(x, p, w_fc, b_fc, fs=SAMPLE_RATE):
    x = jnp.asarray(x, jnp.float32)
    p = jnp.asarray(p, jnp.float32)
    z = jnp.dot(p, jnp.asarray(w_fc, jnp.float32).T) + jnp.asarray(b_fc, jnp.float32)
    q = jax.nn.sigmoid(z)
    ranges = np.asarray(_peq_band_ranges(fs), np.float32)
    lo = jnp.asarray(ranges[:, 0])[None, :]
    hi = jnp.asarray(ranges[:, 1])[None, :]
    d = q * (hi - lo) + lo

    T = x.shape[-1]
    F = T // 2 + 1
    wk = 2.0 * jnp.pi * jnp.arange(F) / T
    e1 = jnp.exp(-1j * wk)[None, :]
    e2 = jnp.exp(-2j * wk)[None, :]

    H = jnp.ones((x.shape[0], F), jnp.complex64)
    for s, ftype in enumerate(BAND_TYPES):
        g = d[:, 3 * s:3 * s + 1]
        fc = d[:, 3 * s + 1:3 * s + 2]
        qf = d[:, 3 * s + 2:3 * s + 3]
        H = H * _rbj_biquad_response(ftype, g, fc, qf, fs, e1, e2)

    X = jnp.fft.rfft(x, axis=-1)
    y = jnp.fft.irfft(X * H, n=T, axis=-1)
    return y.astype(jnp.float32)


if __name__ == "__main__":
    key = jax.random.PRNGKey(0)
    k_p, k_x, k_w, k_b = jax.random.split(key, 4)

    BS, T = 4, 512   # small demo; F_pad = 384, tf = 128 -> 3 accumulation steps over k

    bound = 1.0 / math.sqrt(22.0)   # torch nn.Linear(22, 18) default-style init
    w_fc = jax.random.uniform(k_w, (18, 22), jnp.float32, minval=-bound, maxval=bound)
    b_fc = jax.random.uniform(k_b, (18,), jnp.float32, minval=-bound, maxval=bound)
    p = jax.random.normal(k_p, (BS, 22), jnp.float32)
    x = 0.1 * jax.random.normal(k_x, (BS, T), jnp.float32)

    y_ref = jax.block_until_ready(autodiff_channel_ref(x, p, w_fc, b_fc, fs=SAMPLE_RATE))
    ref_peak = float(jnp.max(jnp.abs(y_ref)))

    # 1) multi-step frequency accumulation (nk = 3), single batch tile
    y = jax.block_until_ready(
        autodiff_channel(x, p, w_fc, b_fc, fs=SAMPLE_RATE, max_tile_bins=128))
    assert y.shape == (BS, T) and y.dtype == jnp.float32
    err = float(jnp.max(jnp.abs(y - y_ref)))
    assert err <= 0.05 * ref_peak + 1e-4, f"kernel/reference mismatch: {err} (peak {ref_peak})"

    # 2) multiple batch tiles with a padded last tile (exercises the parallel b axis)
    BS2 = 20
    p2 = jnp.tile(p, (5, 1))
    x2 = jnp.tile(x, (5, 1))
    y2 = jax.block_until_ready(
        autodiff_channel(x2, p2, w_fc, b_fc, fs=SAMPLE_RATE,
                         max_tile_bins=128, max_batch_tile=8))
    assert y2.shape == (BS2, T)
    err2 = float(jnp.max(jnp.abs(y2[:BS] - y_ref)))
    assert err2 <= 0.05 * ref_peak + 1e-4, f"batch-tiled kernel/reference mismatch: {err2}"

    print("KERNEL_OK")
</pallas_src>

<mosaic_0001>
module attributes {stable_mosaic.version = 11 : i64} {
  func.func @_autodiff_channel_kernel(%arg0: i32, %arg1: i32, %arg2: memref<8x32xf32, #tpu.memory_space<vmem>>, %arg3: memref<8x512xbf16, #tpu.memory_space<vmem>>, %arg4: memref<512x256xbf16, #tpu.memory_space<vmem>>, %arg5: memref<4x128xf32, #tpu.memory_space<vmem>>, %arg6: memref<8x512xf32, #tpu.memory_space<vmem>>) attributes {dimension_semantics = [#tpu.dimension_semantics<parallel>, #tpu.dimension_semantics<arbitrary>], iteration_bounds = array<i64: 1, 3>, scalar_prefetch = 0 : i64, scratch_operands = 0 : i64, tpu.core_type = #tpu.core_type<tc>, window_params = [{transform_indices = @transform_0, window_bounds = array<i64: 8, 32>}, {transform_indices = @transform_1, window_bounds = array<i64: 8, 512>}, {transform_indices = @transform_2, window_bounds = array<i64: 512, 256>}, {transform_indices = @transform_3, window_bounds = array<i64: 4, 128>}, {transform_indices = @transform_4, window_bounds = array<i64: 8, 512>}]} {
    %c0 = arith.constant 0 : index
    %c0_0 = arith.constant 0 : index
    %0 = vector.load %arg5[%c0, %c0_0] : memref<4x128xf32, #tpu.memory_space<vmem>>, vector<1x128xf32>
    %c1 = arith.constant 1 : index
    %c0_1 = arith.constant 0 : index
    %1 = vector.load %arg5[%c1, %c0_1] : memref<4x128xf32, #tpu.memory_space<vmem>>, vector<1x128xf32>
    %c2 = arith.constant 2 : index
    %c0_2 = arith.constant 0 : index
    %2 = vector.load %arg5[%c2, %c0_2] : memref<4x128xf32, #tpu.memory_space<vmem>>, vector<1x128xf32>
    %c3 = arith.constant 3 : index
    %c0_3 = arith.constant 0 : index
    %3 = vector.load %arg5[%c3, %c0_3] : memref<4x128xf32, #tpu.memory_space<vmem>>, vector<1x128xf32>
    %cst = arith.constant 2.000000e+00 : f32
    %4 = vector.broadcast %cst : f32 to vector<1x128xf32>
    %5 = arith.mulf %4, %0 : vector<1x128xf32>
    %6 = arith.mulf %5, %0 : vector<1x128xf32>
    %cst_4 = arith.constant 1.000000e+00 : f32
    %7 = vector.broadcast %cst_4 : f32 to vector<1x128xf32>
    %8 = arith.subf %6, %7 : vector<1x128xf32>
    %cst_5 = arith.constant 2.000000e+00 : f32
    %9 = vector.broadcast %cst_5 : f32 to vector<1x128xf32>
    %10 = arith.mulf %9, %1 : vector<1x128xf32>
    %11 = arith.mulf %10, %0 : vector<1x128xf32>
    %c0_6 = arith.constant 0 : index
    %c0_7 = arith.constant 0 : index
    %12 = vector.load %arg2[%c0_6, %c0_7] : memref<8x32xf32, #tpu.memory_space<vmem>>, vector<8x32xf32>
    %13 = vector.extract_strided_slice %12 {offsets = [0, 0], sizes = [8, 1], strides = [1, 1]} : vector<8x32xf32> to vector<8x1xf32>
    %14 = vector.extract_strided_slice %12 {offsets = [0, 6], sizes = [8, 1], strides = [1, 1]} : vector<8x32xf32> to vector<8x1xf32>
    %15 = vector.extract_strided_slice %12 {offsets = [0, 12], sizes = [8, 1], strides = [1, 1]} : vector<8x32xf32> to vector<8x1xf32>
    %16 = vector.extract_strided_slice %12 {offsets = [0, 18], sizes = [8, 1], strides = [1, 1]} : vector<8x32xf32> to vector<8x1xf32>
    %17 = vector.extract_strided_slice %12 {offsets = [0, 24], sizes = [8, 1], strides = [1, 1]} : vector<8x32xf32> to vector<8x1xf32>
    %18 = vector.broadcast %14 : vector<8x1xf32> to vector<8x128xf32>
    %19 = vector.broadcast %0 : vector<1x128xf32> to vector<8x128xf32>
    %20 = arith.mulf %18, %19 : vector<8x128xf32>
    %21 = vector.broadcast %13 : vector<8x1xf32> to vector<8x128xf32>
    %22 = arith.addf %21, %20 : vector<8x128xf32>
    %23 = vector.broadcast %15 : vector<8x1xf32> to vector<8x128xf32>
    %24 = vector.broadcast %8 : vector<1x128xf32> to vector<8x128xf32>
    %25 = arith.mulf %23, %24 : vector<8x128xf32>
    %26 = arith.addf %22, %25 : vector<8x128xf32>
    %27 = vector.broadcast %14 : vector<8x1xf32> to vector<8x128xf32>
    %28 = vector.broadcast %1 : vector<1x128xf32> to vector<8x128xf32>
    %29 = arith.mulf %27, %28 : vector<8x128xf32>
    %30 = vector.broadcast %15 : vector<8x1xf32> to vector<8x128xf32>
    %31 = vector.broadcast %11 : vector<1x128xf32> to vector<8x128xf32>
    %32 = arith.mulf %30, %31 : vector<8x128xf32>
    %33 = arith.addf %29, %32 : vector<8x128xf32>
    %cst_8 = arith.constant 0.000000e+00 : f32
    %34 = vector.broadcast %cst_8 : f32 to vector<8x128xf32>
    %35 = arith.subf %34, %33 : vector<8x128xf32>
    %36 = vector.broadcast %16 : vector<8x1xf32> to vector<8x128xf32>
    %37 = vector.broadcast %0 : vector<1x128xf32> to vector<8x128xf32>
    %38 = arith.mulf %36, %37 : vector<8x128xf32>
    %cst_9 = arith.constant 1.000000e+00 : f32
    %39 = vector.broadcast %cst_9 : f32 to vector<8x128xf32>
    %40 = arith.addf %39, %38 : vector<8x128xf32>
    %41 = vector.broadcast %17 : vector<8x1xf32> to vector<8x128xf32>
    %42 = vector.broadcast %8 : vector<1x128xf32> to vector<8x128xf32>
    %43 = arith.mulf %41, %42 : vector<8x128xf32>
    %44 = arith.addf %40, %43 : vector<8x128xf32>
    %45 = vector.broadcast %16 : vector<8x1xf32> to vector<8x128xf32>
    %46 = vector.broadcast %1 : vector<1x128xf32> to vector<8x128xf32>
    %47 = arith.mulf %45, %46 : vector<8x128xf32>
    %48 = vector.broadcast %17 : vector<8x1xf32> to vector<8x128xf32>
    %49 = vector.broadcast %11 : vector<1x128xf32> to vector<8x128xf32>
    %50 = arith.mulf %48, %49 : vector<8x128xf32>
    %51 = arith.addf %47, %50 : vector<8x128xf32>
    %cst_10 = arith.constant 0.000000e+00 : f32
    %52 = vector.broadcast %cst_10 : f32 to vector<8x128xf32>
    %53 = arith.subf %52, %51 : vector<8x128xf32>
    %54 = vector.extract_strided_slice %12 {offsets = [0, 1], sizes = [8, 1], strides = [1, 1]} : vector<8x32xf32> to vector<8x1xf32>
    %55 = vector.extract_strided_slice %12 {offsets = [0, 7], sizes = [8, 1], strides = [1, 1]} : vector<8x32xf32> to vector<8x1xf32>
    %56 = vector.extract_strided_slice %12 {offsets = [0, 13], sizes = [8, 1], strides = [1, 1]} : vector<8x32xf32> to vector<8x1xf32>
    %57 = vector.extract_strided_slice %12 {offsets = [0, 19], sizes = [8, 1], strides = [1, 1]} : vector<8x32xf32> to vector<8x1xf32>
    %58 = vector.extract_strided_slice %12 {offsets = [0, 25], sizes = [8, 1], strides = [1, 1]} : vector<8x32xf32> to vector<8x1xf32>
    %59 = vector.broadcast %55 : vector<8x1xf32> to vector<8x128xf32>
    %60 = vector.broadcast %0 : vector<1x128xf32> to vector<8x128xf32>
    %61 = arith.mulf %59, %60 : vector<8x128xf32>
    %62 = vector.broadcast %54 : vector<8x1xf32> to vector<8x128xf32>
    %63 = arith.addf %62, %61 : vector<8x128xf32>
    %64 = vector.broadcast %56 : vector<8x1xf32> to vector<8x128xf32>
    %65 = vector.broadcast %8 : vector<1x128xf32> to vector<8x128xf32>
    %66 = arith.mulf %64, %65 : vector<8x128xf32>
    %67 = arith.addf %63, %66 : vector<8x128xf32>
    %68 = vector.broadcast %55 : vector<8x1xf32> to vector<8x128xf32>
    %69 = vector.broadcast %1 : vector<1x128xf32> to vector<8x128xf32>
    %70 = arith.mulf %68, %69 : vector<8x128xf32>
    %71 = vector.broadcast %56 : vector<8x1xf32> to vector<8x128xf32>
    %72 = vector.broadcast %11 : vector<1x128xf32> to vector<8x128xf32>
    %73 = arith.mulf %71, %72 : vector<8x128xf32>
    %74 = arith.addf %70, %73 : vector<8x128xf32>
    %cst_11 = arith.constant 0.000000e+00 : f32
    %75 = vector.broadcast %cst_11 : f32 to vector<8x128xf32>
    %76 = arith.subf %75, %74 : vector<8x128xf32>
    %77 = vector.broadcast %57 : vector<8x1xf32> to vector<8x128xf32>
    %78 = vector.broadcast %0 : vector<1x128xf32> to vector<8x128xf32>
    %79 = arith.mulf %77, %78 : vector<8x128xf32>
    %cst_12 = arith.constant 1.000000e+00 : f32
    %80 = vector.broadcast %cst_12 : f32 to vector<8x128xf32>
    %81 = arith.addf %80, %79 : vector<8x128xf32>
    %82 = vector.broadcast %58 : vector<8x1xf32> to vector<8x128xf32>
    %83 = vector.broadcast %8 : vector<1x128xf32> to vector<8x128xf32>
    %84 = arith.mulf %82, %83 : vector<8x128xf32>
    %85 = arith.addf %81, %84 : vector<8x128xf32>
    %86 = vector.broadcast %57 : vector<8x1xf32> to vector<8x128xf32>
    %87 = vector.broadcast %1 : vector<1x128xf32> to vector<8x128xf32>
    %88 = arith.mulf %86, %87 : vector<8x128xf32>
    %89 = vector.broadcast %58 : vector<8x1xf32> to vector<8x128xf32>
    %90 = vector.broadcast %11 : vector<1x128xf32> to vector<8x128xf32>
    %91 = arith.mulf %89, %90 : vector<8x128xf32>
    %92 = arith.addf %88, %91 : vector<8x128xf32>
    %cst_13 = arith.constant 0.000000e+00 : f32
    %93 = vector.broadcast %cst_13 : f32 to vector<8x128xf32>
    %94 = arith.subf %93, %92 : vector<8x128xf32>
    %95 = arith.mulf %26, %67 : vector<8x128xf32>
    %96 = arith.mulf %35, %76 : vector<8x128xf32>
    %97 = arith.subf %95, %96 : vector<8x128xf32>
    %98 = arith.mulf %26, %76 : vector<8x128xf32>
    %99 = arith.mulf %35, %67 : vector<8x128xf32>
    %100 = arith.addf %98, %99 : vector<8x128xf32>
    %101 = arith.mulf %44, %85 : vector<8x128xf32>
    %102 = arith.mulf %53, %94 : vector<8x128xf32>
    %103 = arith.subf %101, %102 : vector<8x128xf32>
    %104 = arith.mulf %44, %94 : vector<8x128xf32>
    %105 = arith.mulf %53, %85 : vector<8x128xf32>
    %106 = arith.addf %104, %105 : vector<8x128xf32>
    %107 = vector.extract_strided_slice %12 {offsets = [0, 2], sizes = [8, 1], strides = [1, 1]} : vector<8x32xf32> to vector<8x1xf32>
    %108 = vector.extract_strided_slice %12 {offsets = [0, 8], sizes = [8, 1], strides = [1, 1]} : vector<8x32xf32> to vector<8x1xf32>
    %109 = vector.extract_strided_slice %12 {offsets = [0, 14], sizes = [8, 1], strides = [1, 1]} : vector<8x32xf32> to vector<8x1xf32>
    %110 = vector.extract_strided_slice %12 {offsets = [0, 20], sizes = [8, 1], strides = [1, 1]} : vector<8x32xf32> to vector<8x1xf32>
    %111 = vector.extract_strided_slice %12 {offsets = [0, 26], sizes = [8, 1], strides = [1, 1]} : vector<8x32xf32> to vector<8x1xf32>
    %112 = vector.broadcast %108 : vector<8x1xf32> to vector<8x128xf32>
    %113 = vector.broadcast %0 : vector<1x128xf32> to vector<8x128xf32>
    %114 = arith.mulf %112, %113 : vector<8x128xf32>
    %115 = vector.broadcast %107 : vector<8x1xf32> to vector<8x128xf32>
    %116 = arith.addf %115, %114 : vector<8x128xf32>
    %117 = vector.broadcast %109 : vector<8x1xf32> to vector<8x128xf32>
    %118 = vector.broadcast %8 : vector<1x128xf32> to vector<8x128xf32>
    %119 = arith.mulf %117, %118 : vector<8x128xf32>
    %120 = arith.addf %116, %119 : vector<8x128xf32>
    %121 = vector.broadcast %108 : vector<8x1xf32> to vector<8x128xf32>
    %122 = vector.broadcast %1 : vector<1x128xf32> to vector<8x128xf32>
    %123 = arith.mulf %121, %122 : vector<8x128xf32>
    %124 = vector.broadcast %109 : vector<8x1xf32> to vector<8x128xf32>
    %125 = vector.broadcast %11 : vector<1x128xf32> to vector<8x128xf32>
    %126 = arith.mulf %124, %125 : vector<8x128xf32>
    %127 = arith.addf %123, %126 : vector<8x128xf32>
    %cst_14 = arith.constant 0.000000e+00 : f32
    %128 = vector.broadcast %cst_14 : f32 to vector<8x128xf32>
    %129 = arith.subf %128, %127 : vector<8x128xf32>
    %130 = vector.broadcast %110 : vector<8x1xf32> to vector<8x128xf32>
    %131 = vector.broadcast %0 : vector<1x128xf32> to vector<8x128xf32>
    %132 = arith.mulf %130, %131 : vector<8x128xf32>
    %cst_15 = arith.constant 1.000000e+00 : f32
    %133 = vector.broadcast %cst_15 : f32 to vector<8x128xf32>
    %134 = arith.addf %133, %132 : vector<8x128xf32>
    %135 = vector.broadcast %111 : vector<8x1xf32> to vector<8x128xf32>
    %136 = vector.broadcast %8 : vector<1x128xf32> to vector<8x128xf32>
    %137 = arith.mulf %135, %136 : vector<8x128xf32>
    %138 = arith.addf %134, %137 : vector<8x128xf32>
    %139 = vector.broadcast %110 : vector<8x1xf32> to vector<8x128xf32>
    %140 = vector.broadcast %1 : vector<1x128xf32> to vector<8x128xf32>
    %141 = arith.mulf %139, %140 : vector<8x128xf32>
    %142 = vector.broadcast %111 : vector<8x1xf32> to vector<8x128xf32>
    %143 = vector.broadcast %11 : vector<1x128xf32> to vector<8x128xf32>
    %144 = arith.mulf %142, %143 : vector<8x128xf32>
    %145 = arith.addf %141, %144 : vector<8x128xf32>
    %cst_16 = arith.constant 0.000000e+00 : f32
    %146 = vector.broadcast %cst_16 : f32 to vector<8x128xf32>
    %147 = arith.subf %146, %145 : vector<8x128xf32>
    %148 = arith.mulf %97, %120 : vector<8x128xf32>
    %149 = arith.mulf %100, %129 : vector<8x128xf32>
    %150 = arith.subf %148, %149 : vector<8x128xf32>
    %151 = arith.mulf %97, %129 : vector<8x128xf32>
    %152 = arith.mulf %100, %120 : vector<8x128xf32>
    %153 = arith.addf %151, %152 : vector<8x128xf32>
    %154 = arith.mulf %103, %138 : vector<8x128xf32>
    %155 = arith.mulf %106, %147 : vector<8x128xf32>
    %156 = arith.subf %154, %155 : vector<8x128xf32>
    %157 = arith.mulf %103, %147 : vector<8x128xf32>
    %158 = arith.mulf %106, %138 : vector<8x128xf32>
    %159 = arith.addf %157, %158 : vector<8x128xf32>
    %160 = vector.extract_strided_slice %12 {offsets = [0, 3], sizes = [8, 1], strides = [1, 1]} : vector<8x32xf32> to vector<8x1xf32>
    %161 = vector.extract_strided_slice %12 {offsets = [0, 9], sizes = [8, 1], strides = [1, 1]} : vector<8x32xf32> to vector<8x1xf32>
    %162 = vector.extract_strided_slice %12 {offsets = [0, 15], sizes = [8, 1], strides = [1, 1]} : vector<8x32xf32> to vector<8x1xf32>
    %163 = vector.extract_strided_slice %12 {offsets = [0, 21], sizes = [8, 1], strides = [1, 1]} : vector<8x32xf32> to vector<8x1xf32>
    %164 = vector.extract_strided_slice %12 {offsets = [0, 27], sizes = [8, 1], strides = [1, 1]} : vector<8x32xf32> to vector<8x1xf32>
    %165 = vector.broadcast %161 : vector<8x1xf32> to vector<8x128xf32>
    %166 = vector.broadcast %0 : vector<1x128xf32> to vector<8x128xf32>
    %167 = arith.mulf %165, %166 : vector<8x128xf32>
    %168 = vector.broadcast %160 : vector<8x1xf32> to vector<8x128xf32>
    %169 = arith.addf %168, %167 : vector<8x128xf32>
    %170 = vector.broadcast %162 : vector<8x1xf32> to vector<8x128xf32>
    %171 = vector.broadcast %8 : vector<1x128xf32> to vector<8x128xf32>
    %172 = arith.mulf %170, %171 : vector<8x128xf32>
    %173 = arith.addf %169, %172 : vector<8x128xf32>
    %174 = vector.broadcast %161 : vector<8x1xf32> to vector<8x128xf32>
    %175 = vector.broadcast %1 : vector<1x128xf32> to vector<8x128xf32>
    %176 = arith.mulf %174, %175 : vector<8x128xf32>
    %177 = vector.broadcast %162 : vector<8x1xf32> to vector<8x128xf32>
    %178 = vector.broadcast %11 : vector<1x128xf32> to vector<8x128xf32>
    %179 = arith.mulf %177, %178 : vector<8x128xf32>
    %180 = arith.addf %176, %179 : vector<8x128xf32>
    %cst_17 = arith.constant 0.000000e+00 : f32
    %181 = vector.broadcast %cst_17 : f32 to vector<8x128xf32>
    %182 = arith.subf %181, %180 : vector<8x128xf32>
    %183 = vector.broadcast %163 : vector<8x1xf32> to vector<8x128xf32>
    %184 = vector.broadcast %0 : vector<1x128xf32> to vector<8x128xf32>
    %185 = arith.mulf %183, %184 : vector<8x128xf32>
    %cst_18 = arith.constant 1.000000e+00 : f32
    %186 = vector.broadcast %cst_18 : f32 to vector<8x128xf32>
    %187 = arith.addf %186, %185 : vector<8x128xf32>
    %188 = vector.broadcast %164 : vector<8x1xf32> to vector<8x128xf32>
    %189 = vector.broadcast %8 : vector<1x128xf32> to vector<8x128xf32>
    %190 = arith.mulf %188, %189 : vector<8x128xf32>
    %191 = arith.addf %187, %190 : vector<8x128xf32>
    %192 = vector.broadcast %163 : vector<8x1xf32> to vector<8x128xf32>
    %193 = vector.broadcast %1 : vector<1x128xf32> to vector<8x128xf32>
    %194 = arith.mulf %192, %193 : vector<8x128xf32>
    %195 = vector.broadcast %164 : vector<8x1xf32> to vector<8x128xf32>
    %196 = vector.broadcast %11 : vector<1x128xf32> to vector<8x128xf32>
    %197 = arith.mulf %195, %196 : vector<8x128xf32>
    %198 = arith.addf %194, %197 : vector<8x128xf32>
    %cst_19 = arith.constant 0.000000e+00 : f32
    %199 = vector.broadcast %cst_19 : f32 to vector<8x128xf32>
    %200 = arith.subf %199, %198 : vector<8x128xf32>
    %201 = arith.mulf %150, %173 : vector<8x128xf32>
    %202 = arith.mulf %153, %182 : vector<8x128xf32>
    %203 = arith.subf %201, %202 : vector<8x128xf32>
    %204 = arith.mulf %150, %182 : vector<8x128xf32>
    %205 = arith.mulf %153, %173 : vector<8x128xf32>
    %206 = arith.addf %204, %205 : vector<8x128xf32>
    %207 = arith.mulf %156, %191 : vector<8x128xf32>
    %208 = arith.mulf %159, %200 : vector<8x128xf32>
    %209 = arith.subf %207, %208 : vector<8x128xf32>
    %210 = arith.mulf %156, %200 : vector<8x128xf32>
    %211 = arith.mulf %159, %191 : vector<8x128xf32>
    %212 = arith.addf %210, %211 : vector<8x128xf32>
    %213 = vector.extract_strided_slice %12 {offsets = [0, 4], sizes = [8, 1], strides = [1, 1]} : vector<8x32xf32> to vector<8x1xf32>
    %214 = vector.extract_strided_slice %12 {offsets = [0, 10], sizes = [8, 1], strides = [1, 1]} : vector<8x32xf32> to vector<8x1xf32>
    %215 = vector.extract_strided_slice %12 {offsets = [0, 16], sizes = [8, 1], strides = [1, 1]} : vector<8x32xf32> to vector<8x1xf32>
    %216 = vector.extract_strided_slice %12 {offsets = [0, 22], sizes = [8, 1], strides = [1, 1]} : vector<8x32xf32> to vector<8x1xf32>
    %217 = vector.extract_strided_slice %12 {offsets = [0, 28], sizes = [8, 1], strides = [1, 1]} : vector<8x32xf32> to vector<8x1xf32>
    %218 = vector.broadcast %214 : vector<8x1xf32> to vector<8x128xf32>
    %219 = vector.broadcast %0 : vector<1x128xf32> to vector<8x128xf32>
    %220 = arith.mulf %218, %219 : vector<8x128xf32>
    %221 = vector.broadcast %213 : vector<8x1xf32> to vector<8x128xf32>
    %222 = arith.addf %221, %220 : vector<8x128xf32>
    %223 = vector.broadcast %215 : vector<8x1xf32> to vector<8x128xf32>
    %224 = vector.broadcast %8 : vector<1x128xf32> to vector<8x128xf32>
    %225 = arith.mulf %223, %224 : vector<8x128xf32>
    %226 = arith.addf %222, %225 : vector<8x128xf32>
    %227 = vector.broadcast %214 : vector<8x1xf32> to vector<8x128xf32>
    %228 = vector.broadcast %1 : vector<1x128xf32> to vector<8x128xf32>
    %229 = arith.mulf %227, %228 : vector<8x128xf32>
    %230 = vector.broadcast %215 : vector<8x1xf32> to vector<8x128xf32>
    %231 = vector.broadcast %11 : vector<1x128xf32> to vector<8x128xf32>
    %232 = arith.mulf %230, %231 : vector<8x128xf32>
    %233 = arith.addf %229, %232 : vector<8x128xf32>
    %cst_20 = arith.constant 0.000000e+00 : f32
    %234 = vector.broadcast %cst_20 : f32 to vector<8x128xf32>
    %235 = arith.subf %234, %233 : vector<8x128xf32>
    %236 = vector.broadcast %216 : vector<8x1xf32> to vector<8x128xf32>
    %237 = vector.broadcast %0 : vector<1x128xf32> to vector<8x128xf32>
    %238 = arith.mulf %236, %237 : vector<8x128xf32>
    %cst_21 = arith.constant 1.000000e+00 : f32
    %239 = vector.broadcast %cst_21 : f32 to vector<8x128xf32>
    %240 = arith.addf %239, %238 : vector<8x128xf32>
    %241 = vector.broadcast %217 : vector<8x1xf32> to vector<8x128xf32>
    %242 = vector.broadcast %8 : vector<1x128xf32> to vector<8x128xf32>
    %243 = arith.mulf %241, %242 : vector<8x128xf32>
    %244 = arith.addf %240, %243 : vector<8x128xf32>
    %245 = vector.broadcast %216 : vector<8x1xf32> to vector<8x128xf32>
    %246 = vector.broadcast %1 : vector<1x128xf32> to vector<8x128xf32>
    %247 = arith.mulf %245, %246 : vector<8x128xf32>
    %248 = vector.broadcast %217 : vector<8x1xf32> to vector<8x128xf32>
    %249 = vector.broadcast %11 : vector<1x128xf32> to vector<8x128xf32>
    %250 = arith.mulf %248, %249 : vector<8x128xf32>
    %251 = arith.addf %247, %250 : vector<8x128xf32>
    %cst_22 = arith.constant 0.000000e+00 : f32
    %252 = vector.broadcast %cst_22 : f32 to vector<8x128xf32>
    %253 = arith.subf %252, %251 : vector<8x128xf32>
    %254 = arith.mulf %203, %226 : vector<8x128xf32>
    %255 = arith.mulf %206, %235 : vector<8x128xf32>
    %256 = arith.subf %254, %255 : vector<8x128xf32>
    %257 = arith.mulf %203, %235 : vector<8x128xf32>
    %258 = arith.mulf %206, %226 : vector<8x128xf32>
    %259 = arith.addf %257, %258 : vector<8x128xf32>
    %260 = arith.mulf %209, %244 : vector<8x128xf32>
    %261 = arith.mulf %212, %253 : vector<8x128xf32>
    %262 = arith.subf %260, %261 : vector<8x128xf32>
    %263 = arith.mulf %209, %253 : vector<8x128xf32>
    %264 = arith.mulf %212, %244 : vector<8x128xf32>
    %265 = arith.addf %263, %264 : vector<8x128xf32>
    %266 = vector.extract_strided_slice %12 {offsets = [0, 5], sizes = [8, 1], strides = [1, 1]} : vector<8x32xf32> to vector<8x1xf32>
    %267 = vector.extract_strided_slice %12 {offsets = [0, 11], sizes = [8, 1], strides = [1, 1]} : vector<8x32xf32> to vector<8x1xf32>
    %268 = vector.extract_strided_slice %12 {offsets = [0, 17], sizes = [8, 1], strides = [1, 1]} : vector<8x32xf32> to vector<8x1xf32>
    %269 = vector.extract_strided_slice %12 {offsets = [0, 23], sizes = [8, 1], strides = [1, 1]} : vector<8x32xf32> to vector<8x1xf32>
    %270 = vector.extract_strided_slice %12 {offsets = [0, 29], sizes = [8, 1], strides = [1, 1]} : vector<8x32xf32> to vector<8x1xf32>
    %271 = vector.broadcast %267 : vector<8x1xf32> to vector<8x128xf32>
    %272 = vector.broadcast %0 : vector<1x128xf32> to vector<8x128xf32>
    %273 = arith.mulf %271, %272 : vector<8x128xf32>
    %274 = vector.broadcast %266 : vector<8x1xf32> to vector<8x128xf32>
    %275 = arith.addf %274, %273 : vector<8x128xf32>
    %276 = vector.broadcast %268 : vector<8x1xf32> to vector<8x128xf32>
    %277 = vector.broadcast %8 : vector<1x128xf32> to vector<8x128xf32>
    %278 = arith.mulf %276, %277 : vector<8x128xf32>
    %279 = arith.addf %275, %278 : vector<8x128xf32>
    %280 = vector.broadcast %267 : vector<8x1xf32> to vector<8x128xf32>
    %281 = vector.broadcast %1 : vector<1x128xf32> to vector<8x128xf32>
    %282 = arith.mulf %280, %281 : vector<8x128xf32>
    %283 = vector.broadcast %268 : vector<8x1xf32> to vector<8x128xf32>
    %284 = vector.broadcast %11 : vector<1x128xf32> to vector<8x128xf32>
    %285 = arith.mulf %283, %284 : vector<8x128xf32>
    %286 = arith.addf %282, %285 : vector<8x128xf32>
    %cst_23 = arith.constant 0.000000e+00 : f32
    %287 = vector.broadcast %cst_23 : f32 to vector<8x128xf32>
    %288 = arith.subf %287, %286 : vector<8x128xf32>
    %289 = vector.broadcast %269 : vector<8x1xf32> to vector<8x128xf32>
    %290 = vector.broadcast %0 : vector<1x128xf32> to vector<8x128xf32>
    %291 = arith.mulf %289, %290 : vector<8x128xf32>
    %cst_24 = arith.constant 1.000000e+00 : f32
    %292 = vector.broadcast %cst_24 : f32 to vector<8x128xf32>
    %293 = arith.addf %292, %291 : vector<8x128xf32>
    %294 = vector.broadcast %270 : vector<8x1xf32> to vector<8x128xf32>
    %295 = vector.broadcast %8 : vector<1x128xf32> to vector<8x128xf32>
    %296 = arith.mulf %294, %295 : vector<8x128xf32>
    %297 = arith.addf %293, %296 : vector<8x128xf32>
    %298 = vector.broadcast %269 : vector<8x1xf32> to vector<8x128xf32>
    %299 = vector.broadcast %1 : vector<1x128xf32> to vector<8x128xf32>
    %300 = arith.mulf %298, %299 : vector<8x128xf32>
    %301 = vector.broadcast %270 : vector<8x1xf32> to vector<8x128xf32>
    %302 = vector.broadcast %11 : vector<1x128xf32> to vector<8x128xf32>
    %303 = arith.mulf %301, %302 : vector<8x128xf32>
    %304 = arith.addf %300, %303 : vector<8x128xf32>
    %cst_25 = arith.constant 0.000000e+00 : f32
    %305 = vector.broadcast %cst_25 : f32 to vector<8x128xf32>
    %306 = arith.subf %305, %304 : vector<8x128xf32>
    %307 = arith.mulf %256, %279 : vector<8x128xf32>
    %308 = arith.mulf %259, %288 : vector<8x128xf32>
    %309 = arith.subf %307, %308 : vector<8x128xf32>
    %310 = arith.mulf %256, %288 : vector<8x128xf32>
    %311 = arith.mulf %259, %279 : vector<8x128xf32>
    %312 = arith.addf %310, %311 : vector<8x128xf32>
    %313 = arith.mulf %262, %297 : vector<8x128xf32>
    %314 = arith.mulf %265, %306 : vector<8x128xf32>
    %315 = arith.subf %313, %314 : vector<8x128xf32>
    %316 = arith.mulf %262, %306 : vector<8x128xf32>
    %317 = arith.mulf %265, %297 : vector<8x128xf32>
    %318 = arith.addf %316, %317 : vector<8x128xf32>
    %319 = arith.mulf %315, %315 : vector<8x128xf32>
    %320 = arith.mulf %318, %318 : vector<8x128xf32>
    %321 = arith.addf %319, %320 : vector<8x128xf32>
    %322 = tpu.reciprocal %321 {approx = true} : vector<8x128xf32> -> vector<8x128xf32>
    %323 = arith.mulf %309, %315 : vector<8x128xf32>
    %324 = arith.mulf %312, %318 : vector<8x128xf32>
    %325 = arith.addf %323, %324 : vector<8x128xf32>
    %326 = arith.mulf %325, %322 : vector<8x128xf32>
    %327 = arith.mulf %312, %315 : vector<8x128xf32>
    %328 = arith.mulf %309, %318 : vector<8x128xf32>
    %329 = arith.subf %327, %328 : vector<8x128xf32>
    %330 = arith.mulf %329, %322 : vector<8x128xf32>
    %c0_26 = arith.constant 0 : index
    %c0_27 = arith.constant 0 : index
    %331 = vector.load %arg4[%c0_26, %c0_27] : memref<512x256xbf16, #tpu.memory_space<vmem>>, vector<512x256xbf16>
    %c0_28 = arith.constant 0 : index
    %c0_29 = arith.constant 0 : index
    %332 = vector.load %arg3[%c0_28, %c0_29] : memref<8x512xbf16, #tpu.memory_space<vmem>>, vector<8x512xbf16>
    %cst_30 = arith.constant dense<0.000000e+00> : vector<8x256xf32>
    %333 = tpu.matmul %332, %331, %cst_30 {dimension_numbers = #tpu.dot_dimension_numbers<[1], [0], [0], [1], [0, 0, 1, 1], [], []>} : vector<8x512xbf16>, vector<512x256xbf16>, vector<8x256xf32> -> vector<8x256xf32>
    %334 = vector.extract_strided_slice %333 {offsets = [0, 0], sizes = [8, 128], strides = [1, 1]} : vector<8x256xf32> to vector<8x128xf32>
    %335 = vector.extract_strided_slice %333 {offsets = [0, 128], sizes = [8, 128], strides = [1, 1]} : vector<8x256xf32> to vector<8x128xf32>
    %336 = arith.mulf %334, %326 : vector<8x128xf32>
    %337 = arith.mulf %335, %330 : vector<8x128xf32>
    %338 = arith.subf %336, %337 : vector<8x128xf32>
    %339 = vector.broadcast %2 : vector<1x128xf32> to vector<8x128xf32>
    %340 = arith.mulf %338, %339 : vector<8x128xf32>
    %341 = arith.truncf %340 : vector<8x128xf32> to vector<8x128xbf16>
    %342 = arith.mulf %334, %330 : vector<8x128xf32>
    %343 = arith.mulf %335, %326 : vector<8x128xf32>
    %344 = arith.addf %342, %343 : vector<8x128xf32>
    %345 = vector.broadcast %3 : vector<1x128xf32> to vector<8x128xf32>
    %346 = arith.mulf %344, %345 : vector<8x128xf32>
    %347 = arith.truncf %346 : vector<8x128xf32> to vector<8x128xbf16>
    %348 = tpu.concatenate %341, %347 in 1 : vector<8x128xbf16>, vector<8x128xbf16> -> vector<8x256xbf16>
    %cst_31 = arith.constant dense<0.000000e+00> : vector<8x512xf32>
    %349 = tpu.matmul %348, %331, %cst_31 {dimension_numbers = #tpu.dot_dimension_numbers<[1], [1], [0], [0], [0, 0, 1, 0], [], []>} : vector<8x256xbf16>, vector<512x256xbf16>, vector<8x512xf32> -> vector<8x512xf32>
    %c0_i32 = arith.constant 0 : i32
    %350 = arith.cmpi eq, %arg1, %c0_i32 : i32
    %351 = arith.extui %350 : i1 to i32
    %c0_i32_32 = arith.constant 0 : i32
    %352 = arith.cmpi ne, %351, %c0_i32_32 : i32
    scf.if %352 {
      %cst_37 = arith.constant 0.000000e+00 : f32
      %356 = vector.broadcast %cst_37 : f32 to vector<8x512xf32>
      %c0_38 = arith.constant 0 : index
      %c0_39 = arith.constant 0 : index
      %357 = vector.load %arg6[%c0_38, %c0_39] : memref<8x512xf32, #tpu.memory_space<vmem>>, vector<8x512xf32>
      tpu.vector_store %arg6[%c0_38, %c0_39], %356 {strides = array<i32>} : memref<8x512xf32, #tpu.memory_space<vmem>>, vector<8x512xf32>,
    } else {
    }
    %c0_33 = arith.constant 0 : index
    %c0_34 = arith.constant 0 : index
    %353 = vector.load %arg6[%c0_33, %c0_34] : memref<8x512xf32, #tpu.memory_space<vmem>>, vector<8x512xf32>
    %354 = arith.addf %353, %349 : vector<8x512xf32>
    %c0_35 = arith.constant 0 : index
    %c0_36 = arith.constant 0 : index
    %355 = vector.load %arg6[%c0_35, %c0_36] : memref<8x512xf32, #tpu.memory_space<vmem>>, vector<8x512xf32>
    tpu.vector_store %arg6[%c0_35, %c0_36], %354 {strides = array<i32>} : memref<8x512xf32, #tpu.memory_space<vmem>>, vector<8x512xf32>,
    return
  }
  func.func @transform_0(%arg0: i32, %arg1: i32) -> (i32, i32) {
    %c0_i32 = arith.constant 0 : i32
    %c0_i32_0 = arith.constant 0 : i32
    return %arg0, %c0_i32 : i32, i32
  }
  func.func @transform_1(%arg0: i32, %arg1: i32) -> (i32, i32) {
    %c0_i32 = arith.constant 0 : i32
    %c0_i32_0 = arith.constant 0 : i32
    return %arg0, %c0_i32 : i32, i32
  }
  func.func @transform_2(%arg0: i32, %arg1: i32) -> (i32, i32) {
    %c0_i32 = arith.constant 0 : i32
    %c0_i32_0 = arith.constant 0 : i32
    return %c0_i32, %arg1 : i32, i32
  }
  func.func @transform_3(%arg0: i32, %arg1: i32) -> (i32, i32) {
    %c0_i32 = arith.constant 0 : i32
    %c0_i32_0 = arith.constant 0 : i32
    return %c0_i32, %arg1 : i32, i32
  }
  func.func @transform_4(%arg0: i32, %arg1: i32) -> (i32, i32) {
    %c0_i32 = arith.constant 0 : i32
    %c0_i32_0 = arith.constant 0 : i32
    return %arg0, %c0_i32 : i32, i32
  }
}

</mosaic_0001>

<bundles_post_ra>
// kernel: tpu_custom_call.1
= control target key start
LH: loop header
LB: loop body
LE: loop exit
PB: predicated region body
PF: predicated region fallthrough
CT: control target
= control target key end

     0   :  { %s2847_s0 = inlined_call_operand.hbm [shape: f32[8,32], index: 0, kind: input, shape index: {}]   ;;  %s2848_s1 = inlined_call_operand.hbm [shape: bf16[8,512], index: 1, kind: input, shape index: {}]   ;;  %s2849_s2 = inlined_call_operand.hbm [shape: bf16[512,768], index: 2, kind: input, shape index: {}]   ;;  %s2850_s3 = inlined_call_operand.hbm [shape: f32[4,384], index: 3, kind: input, shape index: {}]   ;;  %s2851_s4 = inlined_call_operand.hbm [shape: f32[8,512], index: 4, kind: output, shape index: {}]  }
   0x1   :  { %2870 = sst [smem:[#allocation33_spill]] %s2847_s0 }
   0x2   :  { %2871 = sst [smem:[#allocation34_spill]] %s2849_s2 }
   0x3   :  { %9 = vsyncpa [#allocation3], 0 }
   0x4   :  { %10 = vsyncpa [#allocation6], 0 }
   0x5   :  { %11 = vsyncpa [#allocation4], 0  ;;  %s2136_s15 = smov 0   ;;  %s2138_s16 = smov 0  }
   0x6   :  { %s2140_s17 = smov 0   ;;  %s2142_s18 = smov 0  }
   0x7   :  { %s2144_s19 = smov 0   ;;  %s2146_s20 = smov 0  }
   0x8 LB: > { %2872 = sst [smem:[#allocation14_spill]] %s2060_s17  ;;  %s2165_s21 = sadd.s32 4294967295, %s2072_s20   ;;  %s2072_s20 = sphi %s2146_s20, %s17_s20   ;;  %s2068_s19 = sphi %s2144_s19, %s2920_s19   ;;  %s2064_s18 = sphi %s2142_s18, %s2919_s18   ;;  %s2060_s17 = sphi %s2140_s17, %s2915_s17   ;;  %s2056_s16 = sphi %s2138_s16, %s2918_s16   ;;  %s2052_s15 = sphi %s2136_s15, %s2917_s15  }
   0x9   : > { %2873 = sst [smem:[#allocation15_spill]] %s2072_s20  ;;  %s26_s22 = sadd.s32 1, %s2068_s19 }
   0xa   : > { %p27_p0 = scmp.ge.s32.totalorder %s26_s22, 3  ;;  %s88_s23 = sadd.s32 1, %s2060_s17 }
   0xb   : > { %p95_p1 = scmp.ne.s32.totalorder %s2060_s17, %s2056_s16  ;;  %p96_p2 = scmp.eq.s32.totalorder %s2072_s20, 0 }
   0xc   : > { %s2922_s22 = smov (%p27_p0, %s26_s22), 0  ;;  %p101_p4 = scmp.ne.s32.totalorder %s2056_s16, %s2052_s15 }
   0xd   : > { %2874 = sst [smem:[#allocation16_spill]] %s2922_s22  ;;  %p2174_p3 = por %p96_p2, %p95_p1 }
   0xe   : > { %s85_s25 = ssub.s32 %s2068_s19, %s2922_s22  ;;  %p102_p5 = scmp.eq.s32.totalorder %s2165_s21, 0 }
   0xf   : > { %p86_p6 = scmp.eq.s32.totalorder %s85_s25, 0  ;;  %p1362_p7 = scmp.ge.s32.totalorder %s2072_s20, 1 }
  0x10   : > { %p2185_p8 = por %p102_p5, %p101_p4  ;;  %p164_p9 = scmp.lt.s32.totalorder %s2072_s20, 4 }
  0x11   : > { %s2191_s27 = scalar_select %p86_p6, %s2060_s17, %s88_s23  }
  0x12   : > { %p2193_p10 = pnand %p1362_p7, %p164_p9  ;;  %s2879_s0 = sld [smem:[#allocation33_spill]] }
  0x13   : > { %2877 = sst [smem:[#allocation17_spill]] %s2191_s27  ;;  %s2074_s6 = smov [#allocation2]  }
  0x14   : > { %p1719_p11 = pneg %p2193_p10  ;;  %s180_s7 = sshll.u32 %s2074_s6, 4  ;;  %s181_s7 = int_to_ptr.vmem [resolvable:$true] %s180_s7 }
  0x15   : > { %p1735_p13 = scmp.lt.s32.totalorder %s2072_s20, 3  ;;  %s206_s9 = sand.u32 1, %s2072_s20  }
  0x16   : > { %p2204_p12 = pnand %p1719_p11, %p102_p5  ;;  %s208_s11 = sand.u32 1, %s2060_s17  }
  0x17   : > { %p2214_p0 = pnand %p1735_p13, %p2174_p3  ;;  %s1366_s12 = sshll.u32 %s208_s11, 9 }
  0x18   : > { %s178_s5 = sshll.u32 %s2879_s0, 4  ;;  %s1638_s13 = sshll.u32 %s2068_s19, 3  ;;  %s179_s5 = int_to_ptr.hbm [resolvable:$true] %s178_s5 }
  0x19   : > { %1722 = dma.hbm_to_vmem [thread:$0]  (!%p2204_p12), %s179_s5, 128, %s181_s7, [#allocation3]  }
  0x1a   : > { %s2882_s2 = sld [smem:[#allocation34_spill]]  ;;  %s210_s25 = scalar_lea.vmem [#allocation7], %s1366_s12 }
  0x1b   : > { %s218_s29 = sshll.u32 %s210_s25, 4  ;;  %s207_s24 = scalar_lea.sflag [#allocation3], %s206_s9  ;;  %s219_s29 = int_to_ptr.vmem [resolvable:$true] %s218_s29 }
  0x1c   : > { %s2075_s5 = smov 384   ;;  %s2076_s6 = smov 128  }
  0x1d   : > { %s2077_s7 = smov 8   ;;  %s193_s27 = sshll.u32 %s2848_s1, 4  ;;  %s194_s27 = int_to_ptr.hbm [resolvable:$true] %s193_s27 }
  0x1e   : > { %s1369_s14 = sshll.u32 %s208_s11, 2  ;;  %s1370_s15 = sshll.u32 %s2068_s19, 2 }
  0x1f   : > { %s236_s25 = scalar_lea.hbm %s2850_s3, %s1370_s15 }
  0x20   : > { %s215_s23 = scalar_lea.hbm %s2882_s2, %s1638_s13  ;;  %s2078_s13 = smov [#allocation5]  }
  0x21   : > { %s216_s30 = sshll.u32 %s215_s23, 4  ;;  %s195_s12 = sshll.u32 %s2078_s13, 4  ;;  %s217_s30 = int_to_ptr.hbm [resolvable:$true] %s216_s30  ;;  %s196_s12 = int_to_ptr.vmem [resolvable:$true] %s195_s12 }
  0x22   : > { %1729 = dma.hbm_to_vmem [thread:$0]  (!%p2214_p0), %s217_s30, 8192, %s219_s29, %s207_s24, %s2075_s5, %s2076_s6, %s2077_s7  }
  0x23   : > { %1725 = dma.hbm_to_vmem [thread:$0]  (!%p2204_p12), %s194_s27, 256, %s196_s12, [#allocation6]  }
  0x24   : > { %s232_s2 = scalar_lea.vmem [#allocation8], %s1369_s14  ;;  %s238_s20 = sshll.u32 %s236_s25, 4  ;;  %s239_s20 = int_to_ptr.hbm [resolvable:$true] %s238_s20 }
  0x25   : > { %s240_s17 = sshll.u32 %s232_s2, 4  ;;  %249 = sbr.rel (%p2193_p10) target bundleno = 463 (0x1cf), region = 36  ;;  %s241_s17 = int_to_ptr.vmem [resolvable:$true] %s240_s17 }
  0x26   : > { %1732 = dma.hbm_to_vmem [thread:$0]  (!%p2214_p0), %s239_s20, 64, %s241_s17, %s207_s24  }
  0x2a   : > { %2035 = dma.done.wait (%p102_p5), [#allocation3], 128  }
  0x2b   : > { %2037 = vsyncadd (%p102_p5), [#allocation3], 4294967168 }
  0x2c   : > { %2039 = dma.done.wait (%p102_p5), [#allocation6], 256  }
  0x2d   : > { %2041 = vsyncadd (%p102_p5), [#allocation6], 4294967040  ;;  %s261_s0 = sand.u32 1, %s2165_s21   ;;  %s263_s2 = sand.u32 1, %s2056_s16  }
  0x2e   : > { %s1374_s17 = sshll.u32 %s263_s2, 9  ;;  %s262_s20 = scalar_lea.sflag [#allocation3], %s261_s0 }
  0x2f   : > { %s2250_s22 = scalar_lea.vmem [#allocation7], %s1374_s17 }
  0x30   : > { %2043 = dma.done.wait (%p2185_p8), %s262_s20, 8256  }
  0x31   : > { %2045 = vsyncadd (%p2185_p8), %s262_s20, 4294959040  ;;  %v2079_v0 = vmov 19   ;;  %v2080_v1 = vmov 18   ;;  %v2081_v2 = vmov 20   ;;  %v2256_v3 = vld [vmem:[#allocation2] sm:$0xff]  ;;  %v2082_v34 = vmov 25  }
  0x32   : > { %1827 = vset.pattern.permute.xlu1 %v2079_v0  ;;  %1825 = vset.pattern.permute.xlu0 %v2080_v1  ;;  %v1563_v4 = vld [vmem:[%s2250_s22 + $0x170] sm:$0xf]  ;;  %v1686_v5 = vld [vmem:[%s2250_s22 + $0x174] sm:$0xf0]  ;;  %v1555_v16 = vld [vmem:[%s2250_s22 + $0x160] sm:$0xf] }
  0x33   : > { %1829 = vset.pattern.permute.xlu2 %v2081_v2  ;;  %374 = vperm.xlu1 %1827, %v2256_v3   ;;  %v2262_v6 = vor.u32 %v1686_v5, %v1563_v4  ;;  %v1627_v7 = vld [vmem:[%s2250_s22 + $0x1f0] sm:$0xf]  ;;  %v1702_v8 = vld [vmem:[%s2250_s22 + $0x1f4] sm:$0xf0]  ;;  %v1684_v17 = vld [vmem:[%s2250_s22 + $0x164] sm:$0xf0] }
  0x34   : > { %338 = vperm.xlu0 %1825, %v2256_v3   ;;  %v1435_v9 = vld [vmem:[%s2250_s22 + $0x70] sm:$0xf]  ;;  %422 = vperm.xlu2 %1829, %v2256_v3   ;;  %v2268_v10 = vor.u32 %v1702_v8, %v1627_v7  ;;  %v1654_v11 = vld [vmem:[%s2250_s22 + $0x74] sm:$0xf0]  ;;  %v1619_v18 = vld [vmem:[%s2250_s22 + $0x1e0] sm:$0xf]  ;;  %v2282_v19 = vor.u32 %v1684_v17, %v1555_v16 }
  0x35   : > { %v1499_v12 = vld [vmem:[%s2250_s22 + $0xf0] sm:$0xf]  ;;  %v1670_v13 = vld [vmem:[%s2250_s22 + $0xf4] sm:$0xf0]  ;;  %1031 = vmatpush.bf16.msra.mxu2 %v2262_v6  ;;  %v2274_v14 = vor.u32 %v1654_v11, %v1435_v9  ;;  %v1700_v20 = vld [vmem:[%s2250_s22 + $0x1e4] sm:$0xf0] }
  0x36   : > { %v2276_v15 = vor.u32 %v1670_v13, %v1499_v12  ;;  %1044 = vmatpush.bf16.msra.mxu3 %v2268_v10  ;;  %v1427_v21 = vld [vmem:[%s2250_s22 + $0x60] sm:$0xf]  ;;  %v1652_v22 = vld [vmem:[%s2250_s22 + $0x64] sm:$0xf0]  ;;  %v2289_v23 = vor.u32 %v1700_v20, %v1619_v18  ;;  %v1547_v26 = vld [vmem:[%s2250_s22 + $0x150] sm:$0xf] }
  0x37   : > { %1005 = vmatpush.bf16.msra.mxu0 %v2274_v14  ;;  %v1491_v24 = vld [vmem:[%s2250_s22 + $0xe0] sm:$0xf]  ;;  %v1668_v25 = vld [vmem:[%s2250_s22 + $0xe4] sm:$0xf0]  ;;  %v1682_v27 = vld [vmem:[%s2250_s22 + $0x154] sm:$0xf0]  ;;  %v2298_v30 = vor.u32 %v1652_v22, %v1427_v21 }
  0x38   : > { %1018 = vmatpush.bf16.msra.mxu1 %v2276_v15  ;;  %v1611_v28 = vld [vmem:[%s2250_s22 + $0x1d0] sm:$0xf]  ;;  %v1698_v29 = vld [vmem:[%s2250_s22 + $0x1d4] sm:$0xf0]  ;;  %v2301_v31 = vor.u32 %v1668_v25, %v1491_v24  ;;  %v2083_v35 = vmov 24   ;;  %v2305_v36 = vor.u32 %v1682_v27, %v1547_v26  ;;  %v2084_v44 = vmov 26  }
  0x39   : > { %1032 = vmatpush.bf16.msra.mxu2 %v2282_v19  ;;  %v1419_v32 = vld [vmem:[%s2250_s22 + $0x50] sm:$0xf]  ;;  %v1650_v33 = vld [vmem:[%s2250_s22 + $0x54] sm:$0xf0]  ;;  %v2307_v37 = vor.u32 %v1698_v29, %v1611_v28  ;;  %v1539_v40 = vld [vmem:[%s2250_s22 + $0x140] sm:$0xf] }
  0x3a   : > { %1045 = vmatpush.bf16.msra.mxu3 %v2289_v23  ;;  %v1483_v38 = vld [vmem:[%s2250_s22 + $0xd0] sm:$0xf]  ;;  %v1666_v39 = vld [vmem:[%s2250_s22 + $0xd4] sm:$0xf0]  ;;  %v1680_v41 = vld [vmem:[%s2250_s22 + $0x144] sm:$0xf0]  ;;  %v2318_v45 = vor.u32 %v1650_v33, %v1419_v32 }
  0x3b   : > { %1828 = vset.pattern.permute.xlu1 %v2082_v34  ;;  %v1603_v42 = vld [vmem:[%s2250_s22 + $0x1c0] sm:$0xf]  ;;  %v1696_v43 = vld [vmem:[%s2250_s22 + $0x1c4] sm:$0xf0]  ;;  %1006 = vmatpush.bf16.msra.mxu0 %v2298_v30  ;;  %v2322_v46 = vor.u32 %v1666_v39, %v1483_v38  ;;  %v2326_v47 = vor.u32 %v1680_v41, %v1539_v40  ;;  %v1531_v53 = vld [vmem:[%s2250_s22 + $0x130] sm:$0xf] }
  0x3c   : > { %1826 = vset.pattern.permute.xlu0 %v2083_v35  ;;  %380 = vperm.xlu1 %1828, %v2256_v3   ;;  %v2328_v48 = vor.u32 %v1696_v43, %v1603_v42  ;;  %v1411_v49 = vld [vmem:[%s2250_s22 + $0x40] sm:$0xf]  ;;  %v1648_v50 = vld [vmem:[%s2250_s22 + $0x44] sm:$0xf0]  ;;  %v1678_v54 = vld [vmem:[%s2250_s22 + $0x134] sm:$0xf0] }
  0x3d   : > { %344 = vperm.xlu0 %1826, %v2256_v3   ;;  %1830 = vset.pattern.permute.xlu2 %v2084_v44  ;;  %2883 = vst [vmem:[#allocation18_spill] sm:$0xff] %v2326_v47  ;;  %v1475_v51 = vld [vmem:[%s2250_s22 + $0xc0] sm:$0xf]  ;;  %v1664_v52 = vld [vmem:[%s2250_s22 + $0xc4] sm:$0xf0]  ;;  %v2340_v57 = vor.u32 %v1648_v50, %v1411_v49  ;;  %v2085_v61 = vmov 6   ;;  %v2348_v63 = vor.u32 %v1678_v54, %v1531_v53 }
  0x3e   : > { %428 = vperm.xlu2 %1830, %v2256_v3   ;;  %1019 = vmatpush.bf16.msra.mxu1 %v2301_v31  ;;  %v1595_v55 = vld [vmem:[%s2250_s22 + $0x1b0] sm:$0xf]  ;;  %v1694_v56 = vld [vmem:[%s2250_s22 + $0x1b4] sm:$0xf0]  ;;  %v2344_v58 = vor.u32 %v1664_v52, %v1475_v51  ;;  %v2086_v62 = vmov 7   ;;  %v2087_v9 = vmov 12  }
  0x3f   : > { %1033 = vmatpush.bf16.msra.mxu2 %v2305_v36  ;;  %1046 = vmatpush.bf16.msra.mxu3 %v2307_v37  ;;  %v1403_v59 = vld [vmem:[%s2250_s22 + $0x30] sm:$0xf]  ;;  %v1646_v60 = vld [vmem:[%s2250_s22 + $0x34] sm:$0xf0]  ;;  %2884 = vst [vmem:[#allocation19_spill] sm:$0xff] %v2348_v63  ;;  %v2350_v0 = vor.u32 %v1694_v56, %v1595_v55  ;;  %s2369_s26 = sshll.u32 %s263_s2, 2 }
  0x40   : > { %1007 = vmatpush.bf16.msra.mxu0 %v2318_v45  ;;  %v1467_v1 = vld [vmem:[%s2250_s22 + $0xb0] sm:$0xf]  ;;  %v1662_v2 = vld [vmem:[%s2250_s22 + $0xb4] sm:$0xf0]  ;;  %v1523_v4 = vld [vmem:[%s2250_s22 + $0x120] sm:$0xf]  ;;  %v2361_v11 = vor.u32 %v1646_v60, %v1403_v59 }
  0x41   : > { %2885 = vst [vmem:[#allocation20_spill] sm:$0xff] %v2350_v0  ;;  %v1676_v5 = vld [vmem:[%s2250_s22 + $0x124] sm:$0xf0]  ;;  %v1587_v7 = vld [vmem:[%s2250_s22 + $0x1a0] sm:$0xf]  ;;  %v2365_v12 = vor.u32 %v1662_v2, %v1467_v1  ;;  %v2088_v34 = vmov 13  }
  0x42   : > { %1020 = vmatpush.bf16.msra.mxu1 %v2322_v46  ;;  %v1692_v8 = vld [vmem:[%s2250_s22 + $0x1a4] sm:$0xf0]  ;;  %v2373_v13 = vor.u32 %v1676_v5, %v1523_v4  ;;  %v1395_v17 = vld [vmem:[%s2250_s22 + $0x20] sm:$0xf]  ;;  %v1515_v22 = vld [vmem:[%s2250_s22 + $0x110] sm:$0xf] }
  0x43   : > { %1034 = vmatpush.bf16.msra.mxu2 %v2326_v47  ;;  %1047 = vmatpush.bf16.msra.mxu3 %v2328_v48  ;;  %v2375_v16 = vor.u32 %v1692_v8, %v1587_v7  ;;  %v1644_v18 = vld [vmem:[%s2250_s22 + $0x24] sm:$0xf0]  ;;  %v1459_v20 = vld [vmem:[%s2250_s22 + $0xa0] sm:$0xf]  ;;  %v1674_v24 = vld [vmem:[%s2250_s22 + $0x114] sm:$0xf0] }
  0x44   : > { %1831 = vset.pattern.permute.xlu1 %v2085_v61  ;;  %1008 = vmatpush.bf16.msra.mxu0 %v2340_v57  ;;  %2886 = vst [vmem:[#allocation21_spill] sm:$0xff] %v2373_v13  ;;  %v1660_v21 = vld [vmem:[%s2250_s22 + $0xa4] sm:$0xf0]  ;;  %v1579_v25 = vld [vmem:[%s2250_s22 + $0x190] sm:$0xf]  ;;  %v2387_v27 = vor.u32 %v1644_v18, %v1395_v17  ;;  %v2089_v35 = vmov 1   ;;  %v2396_v38 = vor.u32 %v1674_v24, %v1515_v22 }
  0x45   : > { %1833 = vset.pattern.permute.xlu0 %v2086_v62  ;;  %314 = vperm.xlu1 %1831, %v2256_v3   ;;  %2887 = vst [vmem:[#allocation22_spill] sm:$0xff] %v2375_v16  ;;  %v1690_v26 = vld [vmem:[%s2250_s22 + $0x194] sm:$0xf0]  ;;  %v2391_v28 = vor.u32 %v1660_v21, %v1459_v20  ;;  %v1387_v29 = vld [vmem:[%s2250_s22 + $0x10] sm:$0xf]  ;;  %s2408_s27 = scalar_lea.vmem [#allocation8], %s2369_s26 }
  0x46   : > { %354 = vperm.xlu0 %1833, %v2256_v3   ;;  %1832 = vset.pattern.permute.xlu2 %v2087_v9  ;;  %v1642_v32 = vld [vmem:[%s2250_s22 + $0x14] sm:$0xf0]  ;;  %v1451_v33 = vld [vmem:[%s2250_s22 + $0x90] sm:$0xf]  ;;  %2888 = vst [vmem:[#allocation23_spill] sm:$0xff] %v2396_v38  ;;  %v2398_v39 = vor.u32 %v1690_v26, %v1579_v25  ;;  %v2090_v49 = vmov 21  }
  0x47   : > { %325 = vperm.xlu2 %1832, %v2256_v3   ;;  %1021 = vmatpush.bf16.msra.mxu1 %v2344_v58  ;;  %v1658_v40 = vld [vmem:[%s2250_s22 + $0x94] sm:$0xf0]  ;;  %v1507_v41 = vld [vmem:[%s2250_s22 + $0x100] sm:$0xf]  ;;  %v1672_v42 = vld [vmem:[%s2250_s22 + $0x104] sm:$0xf0]  ;;  %v2411_v50 = vor.u32 %v1642_v32, %v1387_v29 }
  0x48   : > { %1035 = vmatpush.bf16.msra.mxu2 %v2348_v63  ;;  %1048 = vmatpush.bf16.msra.mxu3 %v2350_v0  ;;  %2889 = vst [vmem:[#allocation24_spill] sm:$0xff] %v2398_v39  ;;  %v1571_v43 = vld [vmem:[%s2250_s22 + $0x180] sm:$0xf]  ;;  %v1688_v44 = vld [vmem:[%s2250_s22 + $0x184] sm:$0xf0]  ;;  %v2415_v51 = vor.u32 %v1658_v40, %v1451_v33  ;;  %v2420_v53 = vor.u32 %v1672_v42, %v1507_v41  ;;  %v670_v62 = vld [vmem:[#allocation5 + $0x8] sm:$0xff] }
  0x49   : > { %1009 = vmatpush.bf16.msra.mxu0 %v2361_v11  ;;  %v1685_v52 = vld [vmem:[%s2250_s22 + $0x174] sm:$0xf]  ;;  %v1565_v54 = vld [vmem:[%s2250_s22 + $0x178] sm:$0xf0]  ;;  %v2423_v55 = vor.u32 %v1688_v44, %v1571_v43  ;;  %v1379_v60 = vld [vmem:[%s2250_s22] sm:$0xf]  ;;  %v676_v17 = vunpack.c.h.b16 %v670_v62  ;;  %v675_v22 = vunpack.c.l.b16 %v670_v62 }
  0x4a   : > { %2890 = vst [vmem:[#allocation25_spill] sm:$0xff] %v2420_v53  ;;  %v1701_v56 = vld [vmem:[%s2250_s22 + $0x1f4] sm:$0xf]  ;;  %v1629_v59 = vld [vmem:[%s2250_s22 + $0x1f8] sm:$0xf0]  ;;  %v2434_v5 = vor.u32 %v1685_v52, %v1565_v54  ;;  %v2091_v24 = vmov 27  }
  0x4b   : > { %1022 = vmatpush.bf16.msra.mxu1 %v2365_v12  ;;  %2891 = vst [vmem:[#allocation26_spill] sm:$0xff] %v2423_v55  ;;  %v1640_v61 = vld [vmem:[%s2250_s22 + $0x4] sm:$0xf0]  ;;  %v1443_v1 = vld [vmem:[%s2250_s22 + $0x80] sm:$0xf]  ;;  %v2441_v18 = vor.u32 %v1701_v56, %v1629_v59  ;;  %v2092_v25 = vmov 2   ;;  %v2471_v62 = vpack.c.b16 %v675_v22, %v675_v22 }
  0x4c   : > { %1036 = vmatpush.bf16.msra.mxu2 %v2373_v13  ;;  %1049 = vmatpush.bf16.msra.mxu3 %v2375_v16  ;;  %v1656_v2 = vld [vmem:[%s2250_s22 + $0x84] sm:$0xf0]  ;;  %v1653_v4 = vld [vmem:[%s2250_s22 + $0x74] sm:$0xf]  ;;  %v1437_v7 = vld [vmem:[%s2250_s22 + $0x78] sm:$0xf0]  ;;  %v2445_v26 = vor.u32 %v1640_v61, %v1379_v60 }
  0x4d   : > { %1834 = vset.pattern.permute.xlu1 %v2088_v34  ;;  %1010 = vmatpush.bf16.msra.mxu0 %v2387_v27  ;;  %v1669_v8 = vld [vmem:[%s2250_s22 + $0xf4] sm:$0xf]  ;;  %v1501_v9 = vld [vmem:[%s2250_s22 + $0xf8] sm:$0xf0]  ;;  %v1683_v20 = vld [vmem:[%s2250_s22 + $0x164] sm:$0xf]  ;;  %v2447_v29 = vor.u32 %v1656_v2, %v1443_v1  ;;  %v2453_v34 = vor.u32 %v1653_v4, %v1437_v7 }
  0x4e   : > { %1838 = vset.pattern.permute.xlu0 %v2089_v35  ;;  %364 = vperm.xlu1 %1834, %v2256_v3   ;;  %v1557_v21 = vld [vmem:[%s2250_s22 + $0x168] sm:$0xf0]  ;;  %v1699_v32 = vld [vmem:[%s2250_s22 + $0x1e4] sm:$0xf]  ;;  %v2455_v35 = vor.u32 %v1669_v8, %v1501_v9  ;;  %v669_v40 = vld [vmem:[#allocation5] sm:$0xff]  ;;  %v2093_v41 = vmov 0  }
  0x4f   : > { %359 = vperm.xlu0 %1838, %v2256_v3   ;;  %1835 = vset.pattern.permute.xlu2 %v2090_v49  ;;  %v1621_v33 = vld [vmem:[%s2250_s22 + $0x1e8] sm:$0xf0]  ;;  %v2458_v42 = vor.u32 %v1683_v20, %v1557_v21  ;;  %v1651_v43 = vld [vmem:[%s2250_s22 + $0x64] sm:$0xf]  ;;  %v2462_v49 = vpack.c.b16 %v676_v17, %v676_v17  ;;  %v673_v52 = vunpack.c.l.b16 %v669_v40  ;;  %v674_v54 = vunpack.c.h.b16 %v669_v40  ;;  %v1681_v61 = vld [vmem:[%s2250_s22 + $0x154] sm:$0xf] }
  0x50   : > { %470 = vperm.xlu2 %1835, %v2256_v3   ;;  %1023 = vmatpush.bf16.msra.mxu1 %v2391_v28  ;;  %v1429_v44 = vld [vmem:[%s2250_s22 + $0x68] sm:$0xf0]  ;;  %v2466_v56 = vor.u32 %v1699_v32, %v1621_v33  ;;  %v1667_v59 = vld [vmem:[%s2250_s22 + $0xe4] sm:$0xf]  ;;  %v1549_v1 = vld [vmem:[%s2250_s22 + $0x158] sm:$0xf0] }
  0x51   : > { %1037 = vmatpush.bf16.msra.mxu2 %v2396_v38  ;;  %1050 = vmatpush.bf16.msra.mxu3 %v2398_v39  ;;  %v1493_v60 = vld [vmem:[%s2250_s22 + $0xe8] sm:$0xf0]  ;;  %v1697_v2 = vld [vmem:[%s2250_s22 + $0x1d4] sm:$0xf]  ;;  %v1613_v4 = vld [vmem:[%s2250_s22 + $0x1d8] sm:$0xf0]  ;;  %v2478_v7 = vpack.c.b16 %v673_v52, %v673_v52  ;;  %v2480_v8 = vpack.c.b16 %v674_v54, %v674_v54  ;;  %v2484_v9 = vor.u32 %v1651_v43, %v1429_v44 }
  0x52   : > { %1011 = vmatpush.bf16.msra.mxu0 %v2411_v50  ;;  %v2487_v17 = vor.u32 %v1667_v59, %v1493_v60  ;;  %v1649_v20 = vld [vmem:[%s2250_s22 + $0x54] sm:$0xf]  ;;  %v1421_v21 = vld [vmem:[%s2250_s22 + $0x58] sm:$0xf0]  ;;  %v2493_v22 = vor.u32 %v1681_v61, %v1549_v1  ;;  %v1679_v33 = vld [vmem:[%s2250_s22 + $0x144] sm:$0xf] }
  0x53   : > { %v1485_v32 = vld [vmem:[%s2250_s22 + $0xd8] sm:$0xf0]  ;;  %v1541_v40 = vld [vmem:[%s2250_s22 + $0x148] sm:$0xf0]  ;;  %v2094_v44 = vmov 8   ;;  %v2507_v52 = vor.u32 %v1649_v20, %v1421_v21  ;;  %v2095_v20 = vmov 3  }
  0x54   : > { %1024 = vmatpush.bf16.msra.mxu1 %v2415_v51  ;;  %v1605_v43 = vld [vmem:[%s2250_s22 + $0x1c8] sm:$0xf0]  ;;  %v1647_v59 = vld [vmem:[%s2250_s22 + $0x44] sm:$0xf]  ;;  %v2517_v61 = vor.u32 %v1679_v33, %v1541_v40  ;;  %v2096_v21 = vmov 14   ;;  %v2097_v13 = vmov 22  }
  0x55   : > { %1038 = vmatpush.bf16.msra.mxu2 %v2420_v53  ;;  %1051 = vmatpush.bf16.msra.mxu3 %v2423_v55  ;;  %v1413_v60 = vld [vmem:[%s2250_s22 + $0x48] sm:$0xf0]  ;;  %v1693_v40 = vld [vmem:[%s2250_s22 + $0x1b4] sm:$0xf]  ;;  %v1675_v55 = vld [vmem:[%s2250_s22 + $0x124] sm:$0xf] }
  0x56   : > { %1836 = vset.pattern.permute.xlu1 %v2091_v24  ;;  %1012 = vmatpush.bf16.msra.mxu0 %v2445_v26  ;;  %v2495_v24 = vor.u32 %v1697_v2, %v1613_v4  ;;  %2892 = vst [vmem:[#allocation27_spill] sm:$0xff] %v2517_v61  ;;  %v1663_v2 = vld [vmem:[%s2250_s22 + $0xc4] sm:$0xf]  ;;  %v1477_v4 = vld [vmem:[%s2250_s22 + $0xc8] sm:$0xf0]  ;;  %v2527_v33 = vor.u32 %v1647_v59, %v1413_v60  ;;  %v2098_v63 = vmov 28  }
  0x57   : > { %1843 = vset.pattern.permute.xlu0 %v2092_v25  ;;  %476 = vperm.xlu1 %1836, %v2256_v3   ;;  %v1665_v25 = vld [vmem:[%s2250_s22 + $0xd4] sm:$0xf]  ;;  %v1691_v38 = vld [vmem:[%s2250_s22 + $0x1a4] sm:$0xf]  ;;  %v1589_v39 = vld [vmem:[%s2250_s22 + $0x1a8] sm:$0xf0] }
  0x58   : > { %407 = vperm.xlu0 %1843, %v2256_v3   ;;  %1837 = vset.pattern.permute.xlu2 %v2093_v41  ;;  %v1695_v41 = vld [vmem:[%s2250_s22 + $0x1c4] sm:$0xf]  ;;  %v2511_v54 = vor.u32 %v1665_v25, %v1485_v32  ;;  %v1677_v25 = vld [vmem:[%s2250_s22 + $0x134] sm:$0xf]  ;;  %v1533_v32 = vld [vmem:[%s2250_s22 + $0x138] sm:$0xf0] }
  0x59   : > { %1083 = vmatpush.bf16.msrb.mxu2 %v2434_v5  ;;  %320 = vperm.xlu2 %1837, %v2256_v3   ;;  %v2519_v1 = vor.u32 %v1695_v41, %v1605_v43  ;;  %v1597_v41 = vld [vmem:[%s2250_s22 + $0x1b8] sm:$0xf0]  ;;  %v2532_v43 = vor.u32 %v1663_v2, %v1477_v4  ;;  %v2539_v59 = vor.u32 %v1677_v25, %v1533_v32  ;;  %v1661_v60 = vld [vmem:[%s2250_s22 + $0xb4] sm:$0xf]  ;;  %v1525_v2 = vld [vmem:[%s2250_s22 + $0x128] sm:$0xf0] }
  0x5a   : > { %1096 = vmatpush.bf16.msrb.mxu3 %v2441_v18  ;;  %1025 = vmatpush.bf16.msra.mxu1 %v2447_v29  ;;  %v2543_v53 = vor.u32 %v1693_v40, %v1597_v41  ;;  %v1643_v32 = vld [vmem:[%s2250_s22 + $0x24] sm:$0xf]  ;;  %v1397_v40 = vld [vmem:[%s2250_s22 + $0x28] sm:$0xf0]  ;;  %v2559_v41 = vor.u32 %v1675_v55, %v1525_v2  ;;  %v1673_v16 = vld [vmem:[%s2250_s22 + $0x114] sm:$0xf] }
  0x5b   : > { %1057 = vmatpush.bf16.msrb.mxu0 %v2453_v34  ;;  %1052 = vmatmul.bf16.vlgmr.msra.gmra.mxu3 %v2462_v49  ;;  %2893 = vst [vmem:[#allocation28_spill] sm:$0xff] %v2519_v1  ;;  %v1581_v55 = vld [vmem:[%s2250_s22 + $0x198] sm:$0xf0]  ;;  %v2099_v0 = vmov 17   ;;  %v1445_v47 = vld [vmem:[%s2250_s22 + $0x88] sm:$0xf0] }
  0x5c   : > { %1039 = vmatmul.bf16.vlgmr.msra.gmra.mxu2 %v2471_v62  ;;  %1013 = vmatmul.bf16.vlgmr.msra.gmra.mxu0 %v2478_v7  ;;  %2894 = vst [vmem:[#allocation29_spill] sm:$0xff] %v2539_v59  ;;  %p1633_p1 = scmp.ne.s32.totalorder %s2064_s18, 0 }
  0x5d   : > { %1084 = vmatpush.bf16.msrb.mxu2 %v2458_v42  ;;  %1026 = vmatmul.bf16.vlgmr.msra.gmra.mxu1 %v2480_v8  ;;  %2895 = vst [vmem:[#allocation30_spill] sm:$0xff] %v2543_v53 }
  0x5e   : > { %1070 = vmatpush.bf16.msrb.mxu1 %v2455_v35  ;;  %1097 = vmatpush.bf16.msrb.mxu3 %v2466_v56  ;;  %2896 = vst [vmem:[#allocation31_spill] sm:$0xff] %v2559_v41 }
  0x5f   : > { %1839 = vset.pattern.permute.xlu1 %v2094_v44  ;;  %1058 = vmatpush.bf16.msrb.mxu0 %v2484_v9  ;;  %v1645_v44 = vld [vmem:[%s2250_s22 + $0x34] sm:$0xf] }
  0x60   : > { %402 = vperm.xlu1 %1839, %v2256_v3   ;;  %1848 = vset.pattern.permute.xlu0 %v2095_v20  ;;  %v1405_v20 = vld [vmem:[%s2250_s22 + $0x38] sm:$0xf0] }
  0x61   : > { %1085 = vmatpush.bf16.msrb.mxu2 %v2493_v22  ;;  %1840 = vset.pattern.permute.xlu2 %v2096_v21  ;;  %v1469_v21 = vld [vmem:[%s2250_s22 + $0xb8] sm:$0xf0]  ;;  %v2548_v4 = vor.u32 %v1645_v44, %v1405_v20  ;;  %v1659_v44 = vld [vmem:[%s2250_s22 + $0xa4] sm:$0xf]  ;;  %v1461_v20 = vld [vmem:[%s2250_s22 + $0xa8] sm:$0xf0] }
  0x62   : > { %1071 = vmatpush.bf16.msrb.mxu1 %v2487_v17  ;;  %1098 = vmatpush.bf16.msrb.mxu3 %v2495_v24  ;;  %v2553_v25 = vor.u32 %v1661_v60, %v1469_v21  ;;  %v1517_v60 = vld [vmem:[%s2250_s22 + $0x118] sm:$0xf0]  ;;  %v2569_v21 = vor.u32 %v1643_v32, %v1397_v40  ;;  %v2574_v2 = vor.u32 %v1659_v44, %v1461_v20  ;;  %v1657_v32 = vld [vmem:[%s2250_s22 + $0x94] sm:$0xf]  ;;  %v1671_v20 = vld [vmem:[%s2250_s22 + $0x104] sm:$0xf] }
  0x63   : > { %1059 = vmatpush.bf16.msrb.mxu0 %v2507_v52  ;;  %455 = vperm.xlu0 %1848, %v2256_v3   ;;  %v1453_v40 = vld [vmem:[%s2250_s22 + $0x98] sm:$0xf0] }
  0x64   : > { %412 = vperm.xlu2 %1840, %v2256_v3  }
  0x65   : > { %1086 = vmatpush.bf16.msrb.mxu2 %v2517_v61 }
  0x66   : > { %1072 = vmatpush.bf16.msrb.mxu1 %v2511_v54  ;;  %1099 = vmatpush.bf16.msrb.mxu3 %v2519_v1  ;;  %v2596_v1 = vor.u32 %v1657_v32, %v1453_v40 }
  0x67   : > { %1060 = vmatpush.bf16.msrb.mxu0 %v2527_v33 }
  0x68   : > { %1841 = vset.pattern.permute.xlu1 %v2097_v13  ;;  %v2564_v13 = vor.u32 %v1691_v38, %v1589_v39  ;;  %v1641_v38 = vld [vmem:[%s2250_s22 + $0x14] sm:$0xf]  ;;  %v1389_v39 = vld [vmem:[%s2250_s22 + $0x18] sm:$0xf0] }
  0x69   : > { %518 = vperm.xlu1 %1841, %v2256_v3   ;;  %1087 = vmatpush.bf16.msrb.mxu2 %v2539_v59  ;;  %v1689_v59 = vld [vmem:[%s2250_s22 + $0x194] sm:$0xf] }
  0x6a   : > { %1073 = vmatpush.bf16.msrb.mxu1 %v2532_v43  ;;  %1100 = vmatpush.bf16.msrb.mxu3 %v2543_v53  ;;  %2897 = vst [vmem:[#allocation32_spill] sm:$0xff] %v2564_v13  ;;  %v2579_v53 = vor.u32 %v1673_v16, %v1517_v60  ;;  %v2585_v44 = vor.u32 %v1689_v59, %v1581_v55  ;;  %v1687_v60 = vld [vmem:[%s2250_s22 + $0x184] sm:$0xf]  ;;  %v1381_v55 = vld [vmem:[%s2250_s22 + $0x8] sm:$0xf0] }
  0x6b   : > { %1061 = vmatpush.bf16.msrb.mxu0 %v2548_v4  ;;  %1853 = vset.pattern.permute.xlu0 %v2099_v0  ;;  %v2590_v16 = vor.u32 %v1641_v38, %v1389_v39  ;;  %v1639_v59 = vld [vmem:[%s2250_s22 + $0x4] sm:$0xf] }
  0x6c   : > { %1842 = vset.pattern.permute.xlu2 %v2098_v63  ;;  %v1509_v63 = vld [vmem:[%s2250_s22 + $0x108] sm:$0xf0]  ;;  %556 = vperm.xlu0 %1853, %v2256_v3   ;;  %v1655_v0 = vld [vmem:[%s2250_s22 + $0x84] sm:$0xf]  ;;  %v2610_v39 = vor.u32 %v1639_v59, %v1381_v55 }
  0x6d   : > { %1088 = vmatpush.bf16.msrb.mxu2 %v2559_v41  ;;  %524 = vperm.xlu2 %1842, %v2256_v3   ;;  %v1573_v41 = vld [vmem:[%s2250_s22 + $0x188] sm:$0xf0]  ;;  %v2601_v61 = vor.u32 %v1671_v20, %v1509_v63  ;;  %v2613_v32 = vor.u32 %v1655_v0, %v1445_v47  ;;  %v2102_v47 = vmov 23  }
  0x6e   : > { %1074 = vmatpush.bf16.msrb.mxu1 %v2553_v25  ;;  %1101 = vmatpush.bf16.msrb.mxu3 %v2564_v13  ;;  %v2100_v13 = vmov 9   ;;  %v2607_v38 = vor.u32 %v1687_v60, %v1573_v41  ;;  %v2906_v60 = vld [vmem:[#allocation21_spill] sm:$0xff] }
  0x6f   : > { %1062 = vmatpush.bf16.msrb.mxu0 %v2569_v21 }
  0x71   : > { %1844 = vset.pattern.permute.xlu1 %v2100_v13  ;;  %1089 = vmatpush.bf16.msrb.mxu2 %v2579_v53  ;;  %v2101_v13 = vmov 15  }
  0x72   : > { %1075 = vmatpush.bf16.msrb.mxu1 %v2574_v2  ;;  %450 = vperm.xlu1 %1844, %v2256_v3  }
  0x73   : > { %1102 = vmatpush.bf16.msrb.mxu3 %v2585_v44  ;;  %1063 = vmatpush.bf16.msrb.mxu0 %v2590_v16 }
  0x75   : > { %1090 = vmatpush.bf16.msrb.mxu2 %v2601_v61  ;;  %1845 = vset.pattern.permute.xlu2 %v2101_v13 }
  0x76   : > { %1076 = vmatpush.bf16.msrb.mxu1 %v2596_v1  ;;  %460 = vperm.xlu2 %1845, %v2256_v3  }
  0x77   : > { %1103 = vmatpush.bf16.msrb.mxu3 %v2607_v38  ;;  %1064 = vmatpush.bf16.msrb.mxu0 %v2610_v39 }
  0x78   : > { %1091 = vmatmul.bf16.vlgmr.msrb.gmra.mxu2 %v2471_v62 }
  0x79   : > { %1147 = vmatpush.bf16.xpose.msra.mxu2 %v2276_v15  ;;  %v2103_v15 = vmov 29  }
  0x7a   : > { %1077 = vmatpush.bf16.msrb.mxu1 %v2613_v32  ;;  %1104 = vmatmul.bf16.vlgmr.msrb.gmra.mxu3 %v2462_v49  ;;  %v2901_v49 = vld [vmem:[#allocation20_spill] sm:$0xff] }
  0x7b   : > { %1121 = vmatpush.bf16.xpose.msra.mxu0 %v2274_v14  ;;  %1846 = vset.pattern.permute.xlu1 %v2102_v47  ;;  %v2104_v14 = vmov 10  }
  0x7c   : > { %1065 = vmatmul.bf16.vlgmr.msrb.gmra.mxu0 %v2478_v7  ;;  %566 = vperm.xlu1 %1846, %v2256_v3  }
  0x7d   : > { %1078 = vmatmul.bf16.vlgmr.msrb.gmra.mxu1 %v2480_v8  ;;  %1160 = vmatpush.bf16.xpose.msra.mxu3 %v2455_v35  ;;  %v2106_v35 = vmov 4   ;;  %v2902_v8 = vld [vmem:[#allocation19_spill] sm:$0xff] }
  0x7e   : > { %1134 = vmatpush.bf16.xpose.msra.mxu1 %v2453_v34  ;;  %1855 = vset.pattern.permute.xlu0 %v2103_v15  ;;  %v2105_v34 = vmov 16  }
  0x7f   : > { %1847 = vset.pattern.permute.xlu2 %v2103_v15 }
  0x80   : > { %572 = vperm.xlu2 %1847, %v2256_v3  }
  0x81   : > { %1148 = vmatpush.bf16.xpose.msra.mxu2 %v2301_v31  ;;  %v2108_v31 = vmov 5  }
  0x83   : > { %1122 = vmatpush.bf16.xpose.msra.mxu0 %v2298_v30  ;;  %v2107_v30 = vmov 11  }
  0x84   : > { %1849 = vset.pattern.permute.xlu1 %v2104_v14 }
  0x85   : > { %498 = vperm.xlu1 %1849, %v2256_v3   ;;  %1161 = vmatpush.bf16.xpose.msra.mxu3 %v2487_v17 }
  0x86   : > { %1135 = vmatpush.bf16.xpose.msra.mxu1 %v2484_v9  ;;  %v2709_v9 = vld [vmem:[%s2408_s27] ss:$0 sm:$0xff] }
  0x88   : > { %1850 = vset.pattern.permute.xlu2 %v2105_v34  ;;  %v2907_v34 = vld [vmem:[#allocation31_spill] sm:$0xff] }
  0x89   : > { %1149 = vmatpush.bf16.xpose.msra.mxu2 %v2322_v46  ;;  %508 = vperm.xlu2 %1850, %v2256_v3  }
  0x8b   : > { %1123 = vmatpush.bf16.xpose.msra.mxu0 %v2318_v45 }
  0x8d   : > { %1851 = vset.pattern.permute.xlu1 %v2106_v35  ;;  %1162 = vmatpush.bf16.xpose.msra.mxu3 %v2511_v54  ;;  %v2908_v35 = vld [vmem:[#allocation32_spill] sm:$0xff] }
  0x8e   : > { %1136 = vmatpush.bf16.xpose.msra.mxu1 %v2507_v52  ;;  %503 = vperm.xlu1 %1851, %v2256_v3   ;;  %v2651_v45 = vpop.permute.xlu2 %422 }
  0x8f   : > { %v425_v13 = vmul.f32 %v2709_v9, %v2651_v45 }
  0x91   : > { %1150 = vmatpush.bf16.xpose.msra.mxu2 %v2344_v58  ;;  %1852 = vset.pattern.permute.xlu2 %v2107_v30 }
  0x92   : > { %546 = vperm.xlu2 %1852, %v2256_v3  }
  0x93   : > { %1124 = vmatpush.bf16.xpose.msra.mxu0 %v2340_v57 }
  0x95   : > { %1163 = vmatpush.bf16.xpose.msra.mxu3 %v2532_v43  ;;  %v2904_v43 = vld [vmem:[#allocation30_spill] sm:$0xff] }
  0x96   : > { %1137 = vmatpush.bf16.xpose.msra.mxu1 %v2527_v33  ;;  %1854 = vset.pattern.permute.xlu1 %v2108_v31  ;;  %v2903_v33 = vld [vmem:[#allocation29_spill] sm:$0xff] }
  0x97   : > { %551 = vperm.xlu1 %1854, %v2256_v3  }
  0x98   : > { %v2658_v3 = vpop.permute.xlu2 %428 }
  0x99   : > { %1151 = vmatpush.bf16.xpose.msra.mxu2 %v2365_v12  ;;  %v302_v12 = vld [vmem:[%s2408_s27] sm:$0x1] }
  0x9b   : > { %1125 = vmatpush.bf16.xpose.msra.mxu0 %v2361_v11 }
  0x9d   : > { %1164 = vmatpush.bf16.xpose.msra.mxu3 %v2553_v25 }
  0x9e   : > { %1138 = vmatpush.bf16.xpose.msra.mxu1 %v2548_v4 }
  0xa1   : > { %1152 = vmatpush.bf16.xpose.msra.mxu2 %v2391_v28  ;;  %v2666_v58 = vpop.permute.xlu2 %325 }
  0xa3   : > { %1126 = vmatpush.bf16.xpose.msra.mxu0 %v2387_v27  ;;  %v303_v27 = vld [vmem:[%s2408_s27 + $0x1] sm:$0x1] }
  0xa5   : > { %v375_v46 = vpop.permute.xlu1 %374  ;;  %1165 = vmatpush.bf16.xpose.msra.mxu3 %v2574_v2  ;;  %v2905_v2 = vld [vmem:[#allocation22_spill] sm:$0xff] }
  0xa6   : > { %1139 = vmatpush.bf16.xpose.msra.mxu1 %v2569_v21  ;;  %v377_v4 = vmul.f32 %v2709_v9, %v375_v46 }
  0xa8   : > { %v378_v59 = vadd.f32 1.0, %v377_v4 }
  0xa9   : > { %1153 = vmatpush.bf16.xpose.msra.mxu2 %v2415_v51 }
  0xab   : > { %1127 = vmatpush.bf16.xpose.msra.mxu0 %v2411_v50  ;;  %v306_v50 = vmul.f32 2.0, %v302_v12 }
  0xad   : > { %1166 = vmatpush.bf16.xpose.msra.mxu3 %v2596_v1 }
  0xae   : > { %1140 = vmatpush.bf16.xpose.msra.mxu1 %v2590_v16  ;;  %v381_v57 = vpop.permute.xlu1 %380 }
  0xb1   : > { %1154 = vmatpush.bf16.xpose.msra.mxu2 %v2447_v29  ;;  %v2900_v29 = vld [vmem:[#allocation28_spill] sm:$0xff] }
  0xb3   : > { %1128 = vmatpush.bf16.xpose.msra.mxu0 %v2445_v26 }
  0xb5   : > { %1167 = vmatpush.bf16.xpose.msra.mxu3 %v2613_v32 }
  0xb6   : > { %1141 = vmatpush.bf16.xpose.msra.mxu1 %v2610_v39 }
  0xb7   : > { %v2673_v11 = vpop.permute.xlu1 %314 }
  0xb9   : > { %1199 = vmatpush.bf16.xpose.msrb.mxu2 %v2268_v10  ;;  %v2677_v10 = vpop.permute.xlu2 %470 }
  0xbb   : > { %1173 = vmatpush.bf16.xpose.msrb.mxu0 %v2262_v6 }
  0xbd   : > { %1212 = vmatpush.bf16.xpose.msrb.mxu3 %v2441_v18  ;;  %v2899_v18 = vld [vmem:[#allocation27_spill] sm:$0xff] }
  0xbe   : > { %1186 = vmatpush.bf16.xpose.msrb.mxu1 %v2434_v5 }
  0xc0   : > { %v2681_v6 = vpop.permute.xlu1 %364 }
  0xc1   : > { %1200 = vmatpush.bf16.xpose.msrb.mxu2 %v2289_v23  ;;  %v339_v23 = vpop.permute.xlu0 %338  ;;  %v2688_v28 = vpop.permute.xlu2 %320 }
  0xc2   : > { %v341_v1 = vmul.f32 %v2709_v9, %v339_v23 }
  0xc3   : > { %1174 = vmatpush.bf16.xpose.msrb.mxu0 %v2282_v19  ;;  %v309_v19 = vmul.f32 2.0, %v303_v27 }
  0xc4   : > { %v342_v40 = vadd.f32 1.0, %v341_v1 }
  0xc5   : > { %1213 = vmatpush.bf16.xpose.msrb.mxu3 %v2466_v56  ;;  %v310_v5 = vmul.f32 %v309_v19, %v302_v12  ;;  %v2701_v56 = vld [vmem:[%s2408_s27 + $0x1] ss:$0 sm:$0xff] }
  0xc6   : > { %1187 = vmatpush.bf16.xpose.msrb.mxu1 %v2458_v42  ;;  %v349_v17 = vmul.f32 %v2701_v56, %v339_v23  ;;  %v385_v54 = vmul.f32 %v2701_v56, %v375_v46  ;;  %v433_v30 = vmul.f32 %v2701_v56, %v2651_v45  ;;  %v2909_v23 = vld [vmem:[#allocation24_spill] sm:$0xff] }
  0xc7   : > { %v2703_v62 = vperm.slane %v310_v5, 0 }
  0xc9   : > { %1201 = vmatpush.bf16.xpose.msrb.mxu2 %v2307_v37  ;;  %v2692_v51 = vpop.permute.xlu1 %476  ;;  %v2898_v37 = vld [vmem:[#allocation18_spill] sm:$0xff]  ;;  %v2696_v26 = vpop.permute.xlu2 %412  ;;  %v434_v31 = vmul.f32 %v2658_v3, %v2703_v62 }
  0xca   : > { %v345_v42 = vpop.permute.xlu0 %344 }
  0xcb   : > { %1175 = vmatpush.bf16.xpose.msrb.mxu0 %v2305_v36  ;;  %v307_v36 = vmul.f32 %v306_v50, %v302_v12  ;;  %v426_v12 = vadd.f32 1.0, %v425_v13  ;;  %v2911_v13 = vld [vmem:[#allocation26_spill] sm:$0xff] }
  0xcd   : > { %1214 = vmatpush.bf16.xpose.msrb.mxu3 %v2495_v24  ;;  %v350_v24 = vmul.f32 %v345_v42, %v2703_v62 }
  0xce   : > { %1188 = vmatpush.bf16.xpose.msrb.mxu1 %v2493_v22  ;;  %v386_v22 = vmul.f32 %v381_v57, %v2703_v62 }
  0xcf   : > { %v351_v41 = vadd.f32 %v350_v24, %v349_v17  ;;  %v318_v17 = vmul.f32 %v2709_v9, %v2673_v11  ;;  %v482_v24 = vmul.f32 %v2692_v51, %v2703_v62 }
  0xd0   : > { %v387_v25 = vadd.f32 %v386_v22, %v385_v54  ;;  %v370_v22 = vmul.f32 %v2681_v6, %v2703_v62 }
  0xd1   : > { %1202 = vmatpush.bf16.xpose.msrb.mxu2 %v2328_v48  ;;  %v1376_v48 = vadd.f32 -1.0, %v307_v36  ;;  %v2721_v21 = vpop.permute.xlu2 %524  ;;  %v352_v0 = vsub.f32 0.0, %v351_v41  ;;  %v481_v41 = vmul.f32 %v2701_v56, %v2677_v10 }
  0xd2   : > { %v2705_v7 = vpop.permute.xlu1 %402  ;;  %v355_v16 = vpop.permute.xlu0 %354  ;;  %v388_v55 = vsub.f32 0.0, %v387_v25  ;;  %v332_v25 = vmul.f32 %v2701_v56, %v2673_v11  ;;  %v323_v11 = vadd.f32 %v2688_v28, %v318_v17 }
  0xd3   : > { %1176 = vmatpush.bf16.xpose.msrb.mxu0 %v2898_v37  ;;  %v2714_v52 = vperm.slane %v1376_v48, 0  ;;  %v357_v5 = vmul.f32 %v2709_v9, %v355_v16  ;;  %v417_v28 = vmul.f32 %v2701_v56, %v2705_v7 }
  0xd4   : > { %v396_v46 = vmul.f32 %v388_v55, %v352_v0 }
  0xd5   : > { %1215 = vmatpush.bf16.xpose.msrb.mxu3 %v2900_v29  ;;  %v383_v20 = vmul.f32 %v381_v57, %v2714_v52  ;;  %v347_v63 = vmul.f32 %v345_v42, %v2714_v52  ;;  %v431_v19 = vmul.f32 %v2658_v3, %v2714_v52  ;;  %v435_v29 = vadd.f32 %v434_v31, %v433_v30  ;;  %v2912_v30 = vld [vmem:[#allocation25_spill] sm:$0xff] }
  0xd6   : > { %1189 = vmatpush.bf16.xpose.msrb.mxu1 %v2899_v18  ;;  %v2910_v18 = vld [vmem:[#allocation23_spill] sm:$0xff]  ;;  %v369_v3 = vmul.f32 %v2701_v56, %v355_v16  ;;  %v530_v31 = vmul.f32 %v2721_v21, %v2703_v62  ;;  %v527_v17 = vmul.f32 %v2721_v21, %v2714_v52 }
  0xd7   : > { %v384_v15 = vadd.f32 %v383_v20, %v378_v59  ;;  %v348_v14 = vadd.f32 %v347_v63, %v342_v40  ;;  %v436_v20 = vsub.f32 0.0, %v435_v29  ;;  %v329_v63 = vmul.f32 %v2714_v52, %v2666_v58 }
  0xd9   : > { %1203 = vmatpush.bf16.xpose.msrb.mxu2 %v2901_v49  ;;  %v2729_v32 = vpop.f32.mrf.mxu0  ;;  %v395_v50 = vmul.f32 %v384_v15, %v348_v14  ;;  %v398_v37 = vmul.f32 %v388_v55, %v348_v14  ;;  %v399_v36 = vmul.f32 %v384_v15, %v352_v0  ;;  %v2749_v45 = vpop.permute.xlu2 %460  ;;  %v473_v49 = vmul.f32 %v2709_v9, %v2677_v10 }
  0xda   : > { %v2733_v47 = vpop.f32.mrf.mxu1  ;;  %v360_v48 = vpop.permute.xlu0 %359  ;;  %v371_v55 = vadd.f32 %v370_v22, %v369_v3  ;;  %v483_v10 = vadd.f32 %v482_v24, %v481_v41 }
  0xdb   : > { %1177 = vmatpush.bf16.xpose.msrb.mxu0 %v2902_v8  ;;  %v2727_v39 = vpop.permute.xlu1 %518  ;;  %v397_v42 = vsub.f32 %v395_v50, %v396_v46  ;;  %v400_v4 = vadd.f32 %v399_v36, %v398_v37  ;;  %v362_v40 = vadd.f32 %v360_v48, %v357_v5  ;;  %v474_v16 = vadd.f32 1.0, %v473_v49 }
  0xdc   : > { %v521_v46 = vmul.f32 %v2709_v9, %v2727_v39  ;;  %v484_v37 = vsub.f32 0.0, %v483_v10  ;;  %v415_v49 = vmul.f32 %v2696_v26, %v2714_v52 }
  0xdd   : > { %1216 = vmatpush.bf16.xpose.msrb.mxu3 %v2904_v43  ;;  %v334_v43 = vmul.f32 %v2703_v62, %v2666_v58  ;;  %v444_v15 = vmul.f32 %v436_v20, %v400_v4  ;;  %v418_v58 = vmul.f32 %v2696_v26, %v2703_v62 }
  0xde   : > { %1190 = vmatpush.bf16.xpose.msrb.mxu1 %v2903_v33  ;;  %v2741_v57 = vpop.f32.mrf.mxu3  ;;  %v432_v33 = vadd.f32 %v431_v19, %v426_v12  ;;  %v529_v12 = vmul.f32 %v2701_v56, %v2727_v39  ;;  %v372_v19 = vsub.f32 0.0, %v371_v55  ;;  %v522_v3 = vadd.f32 1.0, %v521_v46 }
  0xdf   : > { %v2743_v27 = vpop.f32.mrf.mxu2  ;;  %v419_v48 = vadd.f32 %v418_v58, %v417_v28  ;;  %v463_v28 = vmul.f32 %v2749_v45, %v2714_v52 }
  0xe0   : > { %v447_v14 = vmul.f32 %v432_v33, %v400_v4  ;;  %v531_v22 = vadd.f32 %v530_v31, %v529_v12 }
  0xe1   : > { %1204 = vmatpush.bf16.xpose.msrb.mxu2 %v2905_v2  ;;  %v1016_v8 = vpop.f32.mrf.mxu0  ;;  %v367_v2 = vmul.f32 %v2681_v6, %v2714_v52  ;;  %v335_v6 = vadd.f32 %v334_v43, %v332_v25  ;;  %v573_v36 = vpop.permute.xlu2 %572 }
  0xe2   : > { %v1029_v1 = vpop.f32.mrf.mxu1 }
  0xe3   : > { %1178 = vmatpush.bf16.xpose.msrb.mxu0 %v2906_v60  ;;  %v443_v60 = vmul.f32 %v432_v33, %v397_v42  ;;  %v336_v5 = vsub.f32 0.0, %v335_v6 }
  0xe4   : > { %v2761_v54 = vpop.permute.xlu1 %450 }
  0xe5   : > { %1217 = vmatpush.bf16.xpose.msrb.mxu3 %v2908_v35  ;;  %v405_v35 = vmul.f32 %v2709_v9, %v2705_v7  ;;  %v390_v24 = vmul.f32 %v372_v19, %v336_v5  ;;  %v465_v26 = vmul.f32 %v2701_v56, %v2761_v54 }
  0xe6   : > { %1191 = vmatpush.bf16.xpose.msrb.mxu1 %v2907_v34  ;;  %v1055_v59 = vpop.f32.mrf.mxu3  ;;  %v368_v34 = vadd.f32 %v367_v2, %v362_v40  ;;  %v578_v2 = vmul.f32 %v573_v36, %v2703_v62 }
  0xe7   : > { %v1042_v0 = vpop.f32.mrf.mxu2 }
  0xe8   : > { %v393_v39 = vmul.f32 %v368_v34, %v336_v5  ;;  %v575_v0 = vmul.f32 %v573_v36, %v2714_v52 }
  0xe9   : > { %1205 = vmatpush.bf16.xpose.msrb.mxu2 %v2909_v23  ;;  %v330_v23 = vadd.f32 %v329_v63, %v323_v11  ;;  %v532_v63 = vsub.f32 0.0, %v531_v22 }
  0xeb   : > { %1179 = vmatpush.bf16.xpose.msrb.mxu0 %v2910_v18  ;;  %v445_v18 = vsub.f32 %v443_v60, %v444_v15  ;;  %v392_v1 = vmul.f32 %v372_v19, %v330_v23 }
  0xed   : > { %1218 = vmatpush.bf16.xpose.msrb.mxu3 %v2585_v44  ;;  %v446_v44 = vmul.f32 %v436_v20, %v397_v42  ;;  %v389_v42 = vmul.f32 %v368_v34, %v330_v23  ;;  %v494_v4 = vmul.f32 %v484_v37, %v445_v18  ;;  %v528_v20 = vadd.f32 %v527_v17, %v522_v3 }
  0xee   : > { %1192 = vmatpush.bf16.xpose.msrb.mxu1 %v2579_v53  ;;  %v479_v53 = vmul.f32 %v2692_v51, %v2714_v52  ;;  %v408_v51 = vpop.permute.xlu0 %407  ;;  %v567_v29 = vpop.permute.xlu1 %566  ;;  %v394_v59 = vadd.f32 %v393_v39, %v392_v1 }
  0xef   : > { %v448_v7 = vadd.f32 %v447_v14, %v446_v44  ;;  %v410_v8 = vadd.f32 %v408_v51, %v405_v35  ;;  %v569_v25 = vmul.f32 %v2709_v9, %v567_v29  ;;  %v577_v21 = vmul.f32 %v2701_v56, %v567_v29  ;;  %v509_v14 = vpop.permute.xlu2 %508 }
  0xf0   : > { %v480_v50 = vadd.f32 %v479_v53, %v474_v16  ;;  %v453_v16 = vmul.f32 %v2709_v9, %v2761_v54  ;;  %v391_v60 = vsub.f32 %v389_v42, %v390_v24 }
  0xf1   : > { %1206 = vmatpush.bf16.xpose.msrb.mxu2 %v2911_v13  ;;  %v492_v43 = vmul.f32 %v484_v37, %v448_v7  ;;  %v416_v41 = vadd.f32 %v415_v49, %v410_v8  ;;  %v570_v13 = vadd.f32 1.0, %v569_v25  ;;  %v579_v44 = vadd.f32 %v578_v2, %v577_v21 }
  0xf2   : > { %v491_v33 = vmul.f32 %v480_v50, %v445_v18  ;;  %v495_v40 = vmul.f32 %v480_v50, %v448_v7  ;;  %v514_v7 = vmul.f32 %v509_v14, %v2703_v62 }
  0xf3   : > { %1180 = vmatpush.bf16.xpose.msrb.mxu0 %v2912_v30  ;;  %v441_v15 = vmul.f32 %v416_v41, %v394_v59  ;;  %v437_v23 = vmul.f32 %v416_v41, %v391_v60  ;;  %v576_v50 = vadd.f32 %v575_v0, %v570_v13  ;;  %v580_v36 = vsub.f32 0.0, %v579_v44 }
  0xf4   : > { %v493_v11 = vsub.f32 %v491_v33, %v492_v43  ;;  %v496_v53 = vadd.f32 %v495_v40, %v494_v4  ;;  %v511_v41 = vmul.f32 %v509_v14, %v2714_v52 }
  0xf5   : > { %1219 = vmatpush.bf16.xpose.msrb.mxu3 %v2607_v38  ;;  %v420_v38 = vsub.f32 0.0, %v419_v48 }
  0xf6   : > { %1193 = vmatpush.bf16.xpose.msrb.mxu1 %v2601_v61  ;;  %v466_v61 = vmul.f32 %v2749_v45, %v2703_v62  ;;  %v456_v55 = vpop.permute.xlu0 %455  ;;  %v539_v58 = vmul.f32 %v528_v20, %v493_v11  ;;  %v540_v35 = vmul.f32 %v532_v63, %v496_v53  ;;  %v542_v51 = vmul.f32 %v532_v63, %v493_v11 }
  0xf7   : > { %v440_v6 = vmul.f32 %v420_v38, %v391_v60  ;;  %v499_v34 = vpop.permute.xlu1 %498  ;;  %v458_v54 = vadd.f32 %v456_v55, %v453_v16  ;;  %v543_v31 = vmul.f32 %v528_v20, %v496_v53  ;;  %v438_v12 = vmul.f32 %v420_v38, %v394_v59  ;;  %v547_v1 = vpop.permute.xlu2 %546 }
  0xf8   : > { %v467_v10 = vadd.f32 %v466_v61, %v465_v26  ;;  %v541_v18 = vsub.f32 %v539_v58, %v540_v35  ;;  %v513_v29 = vmul.f32 %v2701_v56, %v499_v34  ;;  %v501_v24 = vmul.f32 %v2709_v9, %v499_v34 }
  0xf9   : > { %v1066_v30 = vpop.f32.mrf.mxu0  ;;  %v442_v37 = vadd.f32 %v441_v15, %v440_v6  ;;  %v464_v5 = vadd.f32 %v463_v28, %v458_v54  ;;  %v544_v49 = vadd.f32 %v543_v31, %v542_v51  ;;  %v439_v48 = vsub.f32 %v437_v23, %v438_v12 }
  0xfa   : > { %v1079_v46 = vpop.f32.mrf.mxu1  ;;  %v468_v19 = vsub.f32 0.0, %v467_v10  ;;  %v587_v39 = vmul.f32 %v576_v50, %v541_v18  ;;  %v590_v3 = vmul.f32 %v580_v36, %v541_v18  ;;  %v515_v26 = vadd.f32 %v514_v7, %v513_v29 }
  0xfb   : > { %v1092_v42 = vpop.f32.mrf.mxu2  ;;  %v588_v17 = vmul.f32 %v580_v36, %v544_v49  ;;  %v591_v22 = vmul.f32 %v576_v50, %v544_v49  ;;  %v485_v4 = vmul.f32 %v464_v5, %v439_v48  ;;  %v489_v61 = vmul.f32 %v464_v5, %v442_v37 }
  0xfc   : > { %v486_v8 = vmul.f32 %v468_v19, %v442_v37  ;;  %v488_v43 = vmul.f32 %v468_v19, %v439_v48  ;;  %v561_v40 = vmul.f32 %v2701_v56, %v547_v1  ;;  %v516_v55 = vsub.f32 0.0, %v515_v26 }
  0xfd   : > { %v1105_v45 = vpop.f32.mrf.mxu3  ;;  %v589_v63 = vsub.f32 %v587_v39, %v588_v17  ;;  %v592_v16 = vadd.f32 %v591_v22, %v590_v3  ;;  %v549_v6 = vmul.f32 %v2709_v9, %v547_v1  ;;  %v1080_v12 = vadd.f32 %v1079_v46, %v1066_v30  ;;  %v1858_v1 = vld [vmem:[%s2408_s27 + $0x2] ss:$0 sm:$0xff] }
  0xfe   : > { %v557_v33 = vpop.permute.xlu0 %556  ;;  %v487_v59 = vsub.f32 %v485_v4, %v486_v8  ;;  %v490_v11 = vadd.f32 %v489_v61, %v488_v43  ;;  %v1028_v19 = vadd.f32 %v2733_v47, %v2729_v32  ;;  %v1859_v43 = vld [vmem:[%s2408_s27 + $0x3] ss:$0 sm:$0xff] }
  0xff   : > { %v562_v20 = vmul.f32 %v557_v33, %v2703_v62  ;;  %v593_v44 = vmul.f32 %v589_v63, %v589_v63  ;;  %v594_v14 = vmul.f32 %v592_v16, %v592_v16  ;;  %v559_v56 = vmul.f32 %v557_v33, %v2714_v52 }
 0x100   : > { %v504_v25 = vpop.permute.xlu1 %503  ;;  %v534_v34 = vmul.f32 %v516_v55, %v490_v11  ;;  %v536_v58 = vmul.f32 %v516_v55, %v487_v59  ;;  %v1093_v52 = vadd.f32 %v1092_v42, %v1080_v12  ;;  %v1041_v7 = vadd.f32 %v2743_v27, %v1028_v19 }
 0x101   : > { %v1068_v38 = vpop.f32.mrf.mxu0  ;;  %v506_v2 = vadd.f32 %v504_v25, %v501_v24  ;;  %v563_v15 = vadd.f32 %v562_v20, %v561_v40  ;;  %v595_v31 = vadd.f32 %v594_v14, %v593_v44 }
 0x102   : > { %v1081_v21 = vpop.f32.mrf.mxu1  ;;  %v1106_v39 = vadd.f32 %v1105_v45, %v1093_v52  ;;  %v1054_v47 = vadd.f32 %v2741_v57, %v1041_v7 }
 0x103   : > { %v512_v60 = vadd.f32 %v511_v41, %v506_v2  ;;  %v1094_v53 = vpop.f32.mrf.mxu2  ;;  %v564_v54 = vsub.f32 0.0, %v563_v15  ;;  %1860 = vrcp.f32 %v595_v31 }
 0x105   : > { %v1107_v10 = vpop.f32.mrf.mxu3  ;;  %v533_v0 = vmul.f32 %v512_v60, %v487_v59  ;;  %v537_v13 = vmul.f32 %v512_v60, %v490_v11 }
 0x107   : > { %v535_v35 = vsub.f32 %v533_v0, %v534_v34  ;;  %v538_v28 = vadd.f32 %v537_v13, %v536_v58 }
 0x109   : > { %v552_v62 = vpop.permute.xlu1 %551  ;;  %v582_v50 = vmul.f32 %v564_v54, %v538_v28  ;;  %v584_v9 = vmul.f32 %v564_v54, %v535_v35  ;;  %v1861_v32 = vpop.eup %1860 }
 0x10a   : > { %v554_v51 = vadd.f32 %v552_v62, %v549_v6 }
 0x10c   : > { %v560_v23 = vadd.f32 %v559_v56, %v554_v51 }
 0x10e   : > { %v581_v37 = vmul.f32 %v560_v23, %v535_v35  ;;  %v585_v36 = vmul.f32 %v560_v23, %v538_v28 }
 0x110   : > { %v583_v5 = vsub.f32 %v581_v37, %v582_v50  ;;  %v586_v18 = vadd.f32 %v585_v36, %v584_v9 }
 0x112   : > { %v597_v29 = vmul.f32 %v589_v63, %v583_v5  ;;  %v598_v49 = vmul.f32 %v592_v16, %v586_v18  ;;  %v601_v48 = vmul.f32 %v589_v63, %v586_v18  ;;  %v602_v30 = vmul.f32 %v592_v16, %v583_v5 }
 0x114   : > { %v599_v46 = vadd.f32 %v598_v49, %v597_v29  ;;  %v603_v8 = vsub.f32 %v601_v48, %v602_v30 }
 0x116   : > { %v600_v17 = vmul.f32 %v1861_v32, %v599_v46  ;;  %v604_v3 = vmul.f32 %v1861_v32, %v603_v8 }
 0x118   : > { %v1109_v22 = vmul.f32 %v1054_v47, %v600_v17  ;;  %v1110_v24 = vmul.f32 %v1106_v39, %v604_v3  ;;  %v1115_v33 = vmul.f32 %v1054_v47, %v604_v3  ;;  %v1116_v42 = vmul.f32 %v1106_v39, %v600_v17 }
 0x11a   : > { %v1111_v27 = vsub.f32 %v1109_v22, %v1110_v24  ;;  %v1117_v4 = vadd.f32 %v1116_v42, %v1115_v33 }
 0x11c   : > { %v1113_v61 = vmul.f32 %v1858_v1, %v1111_v27  ;;  %v1119_v26 = vmul.f32 %v1859_v43, %v1117_v4 }
 0x11e   : > { %v1114_v25 = vpack.c.bf16 %v1113_v61, %v1113_v61  ;;  %v1120_v38 = vpack.c.bf16 %v1119_v26, %v1119_v26 }
 0x120   : > { %1129 = vmatmul.bf16.vlgmr.msra.gmra.mxu0 %v1114_v25  ;;  %1142 = vmatmul.bf16.vlgmr.msra.gmra.mxu1 %v1120_v38 }
 0x121   : > { %1155 = vmatmul.bf16.vlgmr.msra.gmra.mxu2 %v1114_v25  ;;  %1168 = vmatmul.bf16.vlgmr.msra.gmra.mxu3 %v1120_v38 }
 0x130   : > { %1181 = vmatmul.bf16.vlgmr.msrb.gmra.mxu0 %v1114_v25  ;;  %1194 = vmatmul.bf16.vlgmr.msrb.gmra.mxu1 %v1120_v38 }
 0x131   : > { %1207 = vmatmul.bf16.vlgmr.msrb.gmra.mxu2 %v1114_v25  ;;  %1220 = vmatmul.bf16.vlgmr.msrb.gmra.mxu3 %v1120_v38 }
 0x19d   : > { %v1130_v57 = vpop.f32.mrf.mxu0  ;;  %v1143_v45 = vpop.f32.mrf.mxu1 }
 0x19e   : > { %v1144_v41 = vadd.f32 %v1143_v45, %v1130_v57 }
 0x1a4   : > { %v1156_v2 = vpop.f32.mrf.mxu2  ;;  %v1169_v21 = vpop.f32.mrf.mxu3 }
 0x1a5   : > { %v1170_v40 = vadd.f32 %v1169_v21, %v1156_v2  ;;  %v1132_v20 = vpop.f32.mrf.mxu0  ;;  %v1145_v63 = vpop.f32.mrf.mxu1 }
 0x1ac   : > { %v1158_v16 = vpop.f32.mrf.mxu2  ;;  %v1171_v60 = vpop.f32.mrf.mxu3 }
 0x1ad   : > { %v1182_v59 = vpop.f32.mrf.mxu0  ;;  %v1195_v11 = vpop.f32.mrf.mxu1 }
 0x1ae   : > { %v1196_v55 = vadd.f32 %v1195_v11, %v1182_v59 }
 0x1b4   : > { %v1208_v53 = vpop.f32.mrf.mxu2  ;;  %v1221_v10 = vpop.f32.mrf.mxu3 }
 0x1b5   : > { %v1222_v0 = vadd.f32 %v1221_v10, %v1208_v53  ;;  %v1184_v13 = vpop.f32.mrf.mxu0  ;;  %v1197_v6 = vpop.f32.mrf.mxu1 }
 0x1b8   : > { %1228 = sbr.rel (%p1633_p1) target bundleno = 450 (0x1c2), region = 56 }
 0x1bc   : > { %v1210_v15 = vpop.f32.mrf.mxu2  ;;  %v1223_v44 = vpop.f32.mrf.mxu3 }
 0x1bd   : > { %v2109_v14 = vmov 0.0  }
 0x1be   : > { %1229 = vst [vmem:[#allocation9] sm:$0xff] %v2109_v14 }
 0x1bf   : > { %1230 = vst [vmem:[#allocation9 + $0x8] sm:$0xff] %v2109_v14 }
 0x1c0   : > { %1231 = vst [vmem:[#allocation9 + $0x10] sm:$0xff] %v2109_v14 }
 0x1c1   : > { %1232 = vst [vmem:[#allocation9 + $0x18] sm:$0xff] %v2109_v14 }
 0x1c2 PF: > { %s1256_s10 = sshll.u32 %s2851_s4, 4  ;;  %s2110_s18 = smov [#allocation9]   ;;  %s1257_s10 = int_to_ptr.hbm [resolvable:$true] %s1256_s10 }
 0x1c3   : > { %s1254_s11 = sshll.u32 %s2110_s18, 4  ;;  %p1738_p2 = scmp.eq.s32.totalorder %s2165_s21, 2  ;;  %s1255_s11 = int_to_ptr.vmem [resolvable:$true] %s1254_s11 }
 0x1c5   : > { %v1233_v34 = vld [vmem:[#allocation9] sm:$0xff] }
 0x1c6   : > { %v1234_v58 = vld [vmem:[#allocation9 + $0x8] sm:$0xff]  ;;  %v1237_v62 = vadd.f32 %v1233_v34, %v1144_v41 }
 0x1c7   : > { %v1235_v56 = vld [vmem:[#allocation9 + $0x10] sm:$0xff]  ;;  %v1238_v35 = vadd.f32 %v1234_v58, %v1170_v40 }
 0x1c8   : > { %v1239_v28 = vadd.f32 %v1235_v56, %v1196_v55  ;;  %v1236_v54 = vld [vmem:[#allocation9 + $0x18] sm:$0xff]  ;;  %1241 = vst [vmem:[#allocation9] sm:$0xff] %v1237_v62 }
 0x1c9   : > { %v1240_v51 = vadd.f32 %v1236_v54, %v1222_v0  ;;  %1242 = vst [vmem:[#allocation9 + $0x8] sm:$0xff] %v1238_v35 }
 0x1ca   : > { %1243 = vst [vmem:[#allocation9 + $0x10] sm:$0xff] %v1239_v28 }
 0x1cb   : > { %1244 = vst [vmem:[#allocation9 + $0x18] sm:$0xff] %v1240_v51 }
 0x1cc   : > { %1716 = dma.vmem_to_hbm [thread:$0]  (%p1738_p2), %s1255_s11, 512, %s1257_s10, [#allocation4]  }
 0x1cd   : > { %2047 = dma.done.wait (%p1738_p2), [#allocation4], 512  }
 0x1ce   : > { %2049 = vsyncadd (%p1738_p2), [#allocation4], 4294966784 }
 0x1cf PF: > { %s2913_s29 = sld [smem:[#allocation15_spill]]  ;;  %s2917_s15 = smov %s2056_s16 }
 0x1d0   : > { %s2914_s30 = sld [smem:[#allocation14_spill]]  ;;  %s2919_s18 = smov %s2068_s19 }
 0x1d1   : > { %s2915_s17 = sld [smem:[#allocation17_spill]] }
 0x1d2   : > { %s2916_s24 = sld [smem:[#allocation16_spill]] }
 0x1d5   : > { %s17_s20 = sadd.s32 1, %s2913_s29  }
 0x1d6   : > { %p14_p3 = scmp.ge.s32.totalorder %s17_s20, 5   ;;  %s2918_s16 = smov %s2914_s30 }
 0x1d8   : > { %s2920_s19 = smov %s2916_s24  ;;  %16 = sbr.rel (!%p14_p3) target bundleno = 8 (0x8), region = 98 }
 0x1dd   :  { %1270 = vsyncpa [#allocation3], 1 }
 0x1de   :  { %1272 = vsyncpa [#allocation3 + $0x1], 1 }
 0x1df   :  { %1273 = vsyncpa [#allocation6], 1 }
 0x1e0   :  { %1274 = vsyncpa [#allocation4], 1 }
 0x1e1   :  { %1276 = vsyncpa [#allocation4 + $0x1], 1 }

</bundles_post_ra>
